<compile_context>
chip_gen: v6e
topology: v6e:2x2x1
jax: 0.10.0
libtpu: 0.0.40
codegen_flags: <defaults>
</compile_context>

<pallas_src>
import functools

import jax
import jax.numpy as jnp
from jax.experimental import pallas as pl
from jax.experimental.pallas import tpu as pltpu

EPS = 1e-5


# ------------------------------------------------------------------ fused double_conv kernel

def _double_conv_kernel(x_ref, w1_ref, b1_ref, g1_ref, be1_ref,
                        w2_ref, b2_ref, g2_ref, be2_ref, mreal_ref,
                        o_ref, win_ref, k_ref,
                        *, Wp, M, G, c_in, inv_count):
    """(conv3x3 pad=1 -> train-mode BatchNorm -> ReLU) * 2, everything VMEM-resident.

    Layout: activations are (C, M) with M = N*(H+2)*(W+2); each image carries a one-pixel zero
    ring and is flattened row-major, batches concatenated along lanes.  Tap (dy, dx) of output
    position j then reads input position j + (dy-1)*(W+2) + (dx-1): a static lane shift.

    x_ref:     (Cin, M)       input activation, pad positions already zero
    w*_ref:    (Cout, 9*C)    conv taps flattened so K = 9*C (single MXU matmul per conv)
    b*/g*/be*: (Cout, 1)      conv bias / BN gamma / BN beta
    mreal_ref: (1, M)         1.0 at real pixels, 0.0 on the pad ring
    o_ref:     (Cout, M)      output activation (same padded layout, pad ring zeroed)
    win_ref:   (Cmax, M+2*G)  scratch: activation flanked by G zero guard columns per side
    k_ref:     (9*Cmax, M)    scratch: stacked im2col RHS for the fused-K matmul
    """
    m_real = mreal_ref[...]                                        # (1, M)

    # Zero once: guarantees the guard columns (and any unused rows) read as exact zeros.
    win_ref[...] = jnp.zeros(win_ref.shape, win_ref.dtype)

    def conv_bn_relu(a, c_i, w_ref_, b_ref_, g_ref_, be_ref_):
        # ---- im2col into VMEM scratch: 9 static lane-shifted copies -> (9*c_i, M) ----
        win_ref[0:c_i, G:G + M] = a
        for t in range(9):
            dy, dx = t // 3, t % 3
            start = G - (Wp + 1) + dy * Wp + dx                    # >= 0 because G >= Wp + 1
            k_ref[t * c_i:(t + 1) * c_i, :] = win_ref[0:c_i, start:start + M]

        # ---- single fused-K MXU matmul: (c_out, 9*c_i) @ (9*c_i, M) ----
        y = jnp.dot(w_ref_[...], k_ref[0:9 * c_i, :],
                    preferred_element_type=jnp.float32) + b_ref_[...]

        # ---- fused train-mode BatchNorm (batch stats over real pixels only) + ReLU ----
        mean = jnp.sum(y * m_real, axis=1, keepdims=True) * inv_count
        diff = (y - mean) * m_real
        var = jnp.sum(diff * diff, axis=1, keepdims=True) * inv_count   # biased, two-pass
        scale = g_ref_[...] * jax.lax.rsqrt(var + EPS)
        shift = be_ref_[...] - mean * scale
        # Re-zero the pad ring so the next conv's taps see true zero padding.
        return jnp.maximum(y * scale + shift, 0.0) * m_real

    a1 = conv_bn_relu(x_ref[...], c_in, w1_ref, b1_ref, g1_ref, be1_ref)
    a2 = conv_bn_relu(a1, w1_ref.shape[0], w2_ref, b2_ref, g2_ref, be2_ref)
    o_ref[...] = a2.astype(o_ref.dtype)


# ------------------------------------------------------------------ wrapper / planning

def _tpu_vmem_budget_bytes():
    """~75% of per-core VMEM, generation-aware with a conservative (v7x 64 MiB) fallback."""
    try:
        cap = int(pltpu.get_tpu_info().vmem_capacity_bytes)
    except Exception:
        cap = 64 * 1024 * 1024
    return (3 * cap) // 4


def double_conv_fused(x_nchw, w1, b1, g1, be1, w2, b2, g2, be2):
    """(conv3x3 pad=1 -> BatchNorm(batch stats) -> ReLU) * 2, fully fused in one pallas_call."""
    N, Cin, H, W = x_nchw.shape
    Cout = w1.shape[0]
    Hp, Wp = H + 2, W + 2
    G = max(Wp + 1, 128)            # guard columns; >= Wp+1 required, 128 keeps stores lane-aligned
    L = Hp * Wp
    M = N * L
    c_max = max(Cin, Cout)

    # ---- trace-time VMEM plan (generation-aware budget, explicit vmem_limit_bytes) ----
    est_bytes = 4 * ((Cin + Cout) * M            # kernel input + output activations
                     + c_max * (M + 2 * G)       # guarded window scratch
                     + 9 * c_max * M             # stacked im2col scratch
                     + M                         # real-pixel mask
                     + 9 * Cout * (Cin + Cout))  # weights
    budget = _tpu_vmem_budget_bytes()
    if est_bytes > budget:
        # TODO(synk): add a tiled multi-pallas_call path for activations that do not fit in VMEM.
        raise ValueError(
            f"double_conv working set (~{est_bytes} B) exceeds the VMEM budget ({budget} B); "
            "only the fully fused VMEM-resident path is implemented.")
    vmem_limit = int(min(budget, max(4 * est_bytes, 16 * 1024 * 1024)))

    # ---- tiny one-time layout glue on the raw input (a few KiB at these sizes) ----
    xp = jnp.pad(x_nchw.astype(jnp.float32), ((0, 0), (0, 0), (1, 1), (1, 1)))
    xf = jnp.transpose(xp, (1, 0, 2, 3)).reshape(Cin, M)           # (Cin, N*(H+2)*(W+2))

    rows = (jnp.arange(Hp) >= 1) & (jnp.arange(Hp) <= H)
    cols = (jnp.arange(Wp) >= 1) & (jnp.arange(Wp) <= W)
    m_img = (rows[:, None] & cols[None, :]).astype(jnp.float32).reshape(1, L)
    m_real = jnp.tile(m_img, (1, N))                               # (1, M)

    def prep_w(w):   # (O, I, 3, 3) -> (O, 9*I); K index = (dy*3 + dx)*I + i (tap-major)
        return jnp.transpose(w, (0, 2, 3, 1)).reshape(w.shape[0], -1).astype(jnp.float32)

    def prep_c(v):   # per-channel vector -> (C, 1) column
        return v.reshape(-1, 1).astype(jnp.float32)

    kernel = functools.partial(_double_conv_kernel, Wp=Wp, M=M, G=G,
                               c_in=Cin, inv_count=1.0 / float(N * H * W))
    vspec = pl.BlockSpec(memory_space=pltpu.MemorySpace.VMEM)

    yflat = pl.pallas_call(
        kernel,
        out_shape=jax.ShapeDtypeStruct((Cout, M), jnp.float32),
        in_specs=[vspec] * 10,
        out_specs=vspec,
        scratch_shapes=[
            pltpu.VMEM((c_max, M + 2 * G), jnp.float32),           # guarded activation window
            pltpu.VMEM((9 * c_max, M), jnp.float32),               # stacked im2col operand
        ],
        compiler_params=pltpu.CompilerParams(vmem_limit_bytes=vmem_limit),
    )(xf, prep_w(w1), prep_c(b1), prep_c(g1), prep_c(be1),
      prep_w(w2), prep_c(b2), prep_c(g2), prep_c(be2), m_real)

    # Tiny final layout glue: drop the pad ring, back to NCHW.
    y = yflat.reshape(Cout, N, Hp, Wp)[:, :, 1:H + 1, 1:W + 1]
    return jnp.transpose(y, (1, 0, 2, 3))


@jax.jit
def inconv_forward(x_nchw, params):
    """inconv.forward: (conv3x3 -> BN -> ReLU) * 2 on NCHW input, one fused TPU kernel."""
    # TODO(synk): BatchNorm running_mean/running_var buffer updates (module state) are not
    # emulated; normalization uses batch statistics, matching a fresh nn.BatchNorm2d in train().
    return double_conv_fused(x_nchw,
                             params["w1"], params["b1"], params["g1"], params["be1"],
                             params["w2"], params["b2"], params["g2"], params["be2"])


# ------------------------------------------------------------------ reference (plain JAX)

def reference_forward(x_nchw, params):
    def conv(x, w_oihw, b):
        y = jax.lax.conv_general_dilated(
            x, w_oihw, window_strides=(1, 1), padding="SAME",
            dimension_numbers=("NCHW", "OIHW", "NCHW"))
        return y + b.reshape(1, -1, 1, 1)

    def bn_relu_ref(y, gamma, beta):
        mean = jnp.mean(y, axis=(0, 2, 3), keepdims=True)
        var = jnp.mean(jnp.square(y), axis=(0, 2, 3), keepdims=True) - jnp.square(mean)
        yn = (y - mean) * jax.lax.rsqrt(var + EPS)
        yn = yn * gamma.reshape(1, -1, 1, 1) + beta.reshape(1, -1, 1, 1)
        return jnp.maximum(yn, 0.0)

    y = bn_relu_ref(conv(x_nchw, params["w1"], params["b1"]), params["g1"], params["be1"])
    y = bn_relu_ref(conv(y, params["w2"], params["b2"]), params["g2"], params["be2"])
    return y


# ------------------------------------------------------------------ main

if __name__ == "__main__":
    in_ch, out_ch = 4, 8
    N, H, W = 2, 16, 16

    key = jax.random.PRNGKey(0)
    ks = jax.random.split(key, 9)

    params = {
        "w1": 0.2 * jax.random.normal(ks[0], (out_ch, in_ch, 3, 3), jnp.float32),   # OIHW
        "b1": 0.1 * jax.random.normal(ks[1], (out_ch,), jnp.float32),
        "g1": 1.0 + 0.1 * jax.random.normal(ks[2], (out_ch,), jnp.float32),
        "be1": 0.1 * jax.random.normal(ks[3], (out_ch,), jnp.float32),
        "w2": 0.2 * jax.random.normal(ks[4], (out_ch, out_ch, 3, 3), jnp.float32),
        "b2": 0.1 * jax.random.normal(ks[5], (out_ch,), jnp.float32),
        "g2": 1.0 + 0.1 * jax.random.normal(ks[6], (out_ch,), jnp.float32),
        "be2": 0.1 * jax.random.normal(ks[7], (out_ch,), jnp.float32),
    }

    x = jax.random.normal(ks[8], (N, in_ch, H, W), jnp.float32)   # NCHW, like PyTorch

    out = jax.block_until_ready(inconv_forward(x, params))

    ref = reference_forward(x, params)
    assert out.shape == (N, out_ch, H, W), out.shape
    assert jnp.allclose(out, ref, rtol=1e-4, atol=1e-4), float(jnp.max(jnp.abs(out - ref)))

    print("KERNEL_OK")
</pallas_src>

<mosaic_0001>
module attributes {stable_mosaic.version = 11 : i64} {
  func.func @_double_conv_kernel(%arg0: memref<4x648xf32, #tpu.memory_space<vmem>>, %arg1: memref<8x36xf32, #tpu.memory_space<vmem>>, %arg2: memref<8x1xf32, #tpu.memory_space<vmem>>, %arg3: memref<8x1xf32, #tpu.memory_space<vmem>>, %arg4: memref<8x1xf32, #tpu.memory_space<vmem>>, %arg5: memref<8x72xf32, #tpu.memory_space<vmem>>, %arg6: memref<8x1xf32, #tpu.memory_space<vmem>>, %arg7: memref<8x1xf32, #tpu.memory_space<vmem>>, %arg8: memref<8x1xf32, #tpu.memory_space<vmem>>, %arg9: memref<1x648xf32, #tpu.memory_space<vmem>>, %arg10: memref<8x648xf32, #tpu.memory_space<vmem>>, %arg11: memref<8x904xf32, #tpu.memory_space<vmem>>, %arg12: memref<72x648xf32, #tpu.memory_space<vmem>>) attributes {dimension_semantics = [], scalar_prefetch = 0 : i64, scratch_operands = 2 : i64, tpu.core_type = #tpu.core_type<tc>} {
    %c0 = arith.constant 0 : index
    %c0_0 = arith.constant 0 : index
    %0 = vector.load %arg9[%c0, %c0_0] : memref<1x648xf32, #tpu.memory_space<vmem>>, vector<1x648xf32>
    %cst = arith.constant 0.000000e+00 : f32
    %1 = vector.broadcast %cst : f32 to vector<8x904xf32>
    %c0_1 = arith.constant 0 : index
    %c0_2 = arith.constant 0 : index
    %2 = vector.load %arg11[%c0_1, %c0_2] : memref<8x904xf32, #tpu.memory_space<vmem>>, vector<8x904xf32>
    tpu.vector_store %arg11[%c0_1, %c0_2], %1 {strides = array<i32>} : memref<8x904xf32, #tpu.memory_space<vmem>>, vector<8x904xf32>,
    %c0_3 = arith.constant 0 : index
    %c0_4 = arith.constant 0 : index
    %3 = vector.load %arg0[%c0_3, %c0_4] : memref<4x648xf32, #tpu.memory_space<vmem>>, vector<4x648xf32>
    %c0_5 = arith.constant 0 : index
    %c128 = arith.constant 128 : index
    %4 = vector.load %arg11[%c0_5, %c128] : memref<8x904xf32, #tpu.memory_space<vmem>>, vector<4x648xf32>
    tpu.vector_store %arg11[%c0_5, %c128], %3 {strides = array<i32>} : memref<8x904xf32, #tpu.memory_space<vmem>>, vector<4x648xf32>,
    %c0_6 = arith.constant 0 : index
    %c109 = arith.constant 109 : index
    %5 = vector.load %arg11[%c0_6, %c109] : memref<8x904xf32, #tpu.memory_space<vmem>>, vector<4x648xf32>
    %c0_7 = arith.constant 0 : index
    %c0_8 = arith.constant 0 : index
    %6 = vector.load %arg12[%c0_7, %c0_8] : memref<72x648xf32, #tpu.memory_space<vmem>>, vector<4x648xf32>
    tpu.vector_store %arg12[%c0_7, %c0_8], %5 {strides = array<i32>} : memref<72x648xf32, #tpu.memory_space<vmem>>, vector<4x648xf32>,
    %c0_9 = arith.constant 0 : index
    %c110 = arith.constant 110 : index
    %7 = vector.load %arg11[%c0_9, %c110] : memref<8x904xf32, #tpu.memory_space<vmem>>, vector<4x648xf32>
    %c4 = arith.constant 4 : index
    %c0_10 = arith.constant 0 : index
    %8 = vector.load %arg12[%c4, %c0_10] : memref<72x648xf32, #tpu.memory_space<vmem>>, vector<4x648xf32>
    tpu.vector_store %arg12[%c4, %c0_10], %7 {strides = array<i32>} : memref<72x648xf32, #tpu.memory_space<vmem>>, vector<4x648xf32>,
    %c0_11 = arith.constant 0 : index
    %c111 = arith.constant 111 : index
    %9 = vector.load %arg11[%c0_11, %c111] : memref<8x904xf32, #tpu.memory_space<vmem>>, vector<4x648xf32>
    %c8 = arith.constant 8 : index
    %c0_12 = arith.constant 0 : index
    %10 = vector.load %arg12[%c8, %c0_12] : memref<72x648xf32, #tpu.memory_space<vmem>>, vector<4x648xf32>
    tpu.vector_store %arg12[%c8, %c0_12], %9 {strides = array<i32>} : memref<72x648xf32, #tpu.memory_space<vmem>>, vector<4x648xf32>,
    %c0_13 = arith.constant 0 : index
    %c127 = arith.constant 127 : index
    %11 = vector.load %arg11[%c0_13, %c127] : memref<8x904xf32, #tpu.memory_space<vmem>>, vector<4x648xf32>
    %c12 = arith.constant 12 : index
    %c0_14 = arith.constant 0 : index
    %12 = vector.load %arg12[%c12, %c0_14] : memref<72x648xf32, #tpu.memory_space<vmem>>, vector<4x648xf32>
    tpu.vector_store %arg12[%c12, %c0_14], %11 {strides = array<i32>} : memref<72x648xf32, #tpu.memory_space<vmem>>, vector<4x648xf32>,
    %c0_15 = arith.constant 0 : index
    %c128_16 = arith.constant 128 : index
    %13 = vector.load %arg11[%c0_15, %c128_16] : memref<8x904xf32, #tpu.memory_space<vmem>>, vector<4x648xf32>
    %c16 = arith.constant 16 : index
    %c0_17 = arith.constant 0 : index
    %14 = vector.load %arg12[%c16, %c0_17] : memref<72x648xf32, #tpu.memory_space<vmem>>, vector<4x648xf32>
    tpu.vector_store %arg12[%c16, %c0_17], %13 {strides = array<i32>} : memref<72x648xf32, #tpu.memory_space<vmem>>, vector<4x648xf32>,
    %c0_18 = arith.constant 0 : index
    %c129 = arith.constant 129 : index
    %15 = vector.load %arg11[%c0_18, %c129] : memref<8x904xf32, #tpu.memory_space<vmem>>, vector<4x648xf32>
    %c20 = arith.constant 20 : index
    %c0_19 = arith.constant 0 : index
    %16 = vector.load %arg12[%c20, %c0_19] : memref<72x648xf32, #tpu.memory_space<vmem>>, vector<4x648xf32>
    tpu.vector_store %arg12[%c20, %c0_19], %15 {strides = array<i32>} : memref<72x648xf32, #tpu.memory_space<vmem>>, vector<4x648xf32>,
    %c0_20 = arith.constant 0 : index
    %c145 = arith.constant 145 : index
    %17 = vector.load %arg11[%c0_20, %c145] : memref<8x904xf32, #tpu.memory_space<vmem>>, vector<4x648xf32>
    %c24 = arith.constant 24 : index
    %c0_21 = arith.constant 0 : index
    %18 = vector.load %arg12[%c24, %c0_21] : memref<72x648xf32, #tpu.memory_space<vmem>>, vector<4x648xf32>
    tpu.vector_store %arg12[%c24, %c0_21], %17 {strides = array<i32>} : memref<72x648xf32, #tpu.memory_space<vmem>>, vector<4x648xf32>,
    %c0_22 = arith.constant 0 : index
    %c146 = arith.constant 146 : index
    %19 = vector.load %arg11[%c0_22, %c146] : memref<8x904xf32, #tpu.memory_space<vmem>>, vector<4x648xf32>
    %c28 = arith.constant 28 : index
    %c0_23 = arith.constant 0 : index
    %20 = vector.load %arg12[%c28, %c0_23] : memref<72x648xf32, #tpu.memory_space<vmem>>, vector<4x648xf32>
    tpu.vector_store %arg12[%c28, %c0_23], %19 {strides = array<i32>} : memref<72x648xf32, #tpu.memory_space<vmem>>, vector<4x648xf32>,
    %c0_24 = arith.constant 0 : index
    %c147 = arith.constant 147 : index
    %21 = vector.load %arg11[%c0_24, %c147] : memref<8x904xf32, #tpu.memory_space<vmem>>, vector<4x648xf32>
    %c32 = arith.constant 32 : index
    %c0_25 = arith.constant 0 : index
    %22 = vector.load %arg12[%c32, %c0_25] : memref<72x648xf32, #tpu.memory_space<vmem>>, vector<4x648xf32>
    tpu.vector_store %arg12[%c32, %c0_25], %21 {strides = array<i32>} : memref<72x648xf32, #tpu.memory_space<vmem>>, vector<4x648xf32>,
    %c0_26 = arith.constant 0 : index
    %c0_27 = arith.constant 0 : index
    %23 = vector.load %arg1[%c0_26, %c0_27] : memref<8x36xf32, #tpu.memory_space<vmem>>, vector<8x36xf32>
    %c0_28 = arith.constant 0 : index
    %c0_29 = arith.constant 0 : index
    %24 = vector.load %arg12[%c0_28, %c0_29] : memref<72x648xf32, #tpu.memory_space<vmem>>, vector<36x648xf32>
    %cst_30 = arith.constant dense<0.000000e+00> : vector<8x648xf32>
    %25 = tpu.matmul %23, %24, %cst_30 {dimension_numbers = #tpu.dot_dimension_numbers<[1], [0], [0], [1], [0, 0, 1, 1], [], []>} : vector<8x36xf32>, vector<36x648xf32>, vector<8x648xf32> -> vector<8x648xf32>
    %c0_31 = arith.constant 0 : index
    %c0_32 = arith.constant 0 : index
    %26 = vector.load %arg2[%c0_31, %c0_32] : memref<8x1xf32, #tpu.memory_space<vmem>>, vector<8x1xf32>
    %27 = vector.broadcast %26 : vector<8x1xf32> to vector<8x648xf32>
    %28 = arith.addf %25, %27 : vector<8x648xf32>
    %29 = vector.broadcast %0 : vector<1x648xf32> to vector<8x648xf32>
    %30 = arith.mulf %28, %29 : vector<8x648xf32>
    %cst_33 = arith.constant dense<0.000000e+00> : vector<8xf32>
    %31 = vector.multi_reduction <add>, %30, %cst_33 [1] : vector<8x648xf32> to vector<8xf32>
    %32 = vector.shape_cast %31 : vector<8xf32> to vector<8x1xf32>
    %cst_34 = arith.constant 0.001953125 : f32
    %33 = vector.broadcast %cst_34 : f32 to vector<8x1xf32>
    %34 = arith.mulf %32, %33 : vector<8x1xf32>
    %35 = vector.broadcast %34 : vector<8x1xf32> to vector<8x648xf32>
    %36 = arith.subf %28, %35 : vector<8x648xf32>
    %37 = vector.broadcast %0 : vector<1x648xf32> to vector<8x648xf32>
    %38 = arith.mulf %36, %37 : vector<8x648xf32>
    %39 = arith.mulf %38, %38 : vector<8x648xf32>
    %cst_35 = arith.constant dense<0.000000e+00> : vector<8xf32>
    %40 = vector.multi_reduction <add>, %39, %cst_35 [1] : vector<8x648xf32> to vector<8xf32>
    %41 = vector.shape_cast %40 : vector<8xf32> to vector<8x1xf32>
    %cst_36 = arith.constant 0.001953125 : f32
    %42 = vector.broadcast %cst_36 : f32 to vector<8x1xf32>
    %43 = arith.mulf %41, %42 : vector<8x1xf32>
    %c0_37 = arith.constant 0 : index
    %c0_38 = arith.constant 0 : index
    %44 = vector.load %arg3[%c0_37, %c0_38] : memref<8x1xf32, #tpu.memory_space<vmem>>, vector<8x1xf32>
    %cst_39 = arith.constant 9.99999974E-6 : f32
    %45 = vector.broadcast %cst_39 : f32 to vector<8x1xf32>
    %46 = arith.addf %43, %45 : vector<8x1xf32>
    %47 = math.rsqrt %46 : vector<8x1xf32>
    %48 = arith.mulf %44, %47 : vector<8x1xf32>
    %c0_40 = arith.constant 0 : index
    %c0_41 = arith.constant 0 : index
    %49 = vector.load %arg4[%c0_40, %c0_41] : memref<8x1xf32, #tpu.memory_space<vmem>>, vector<8x1xf32>
    %50 = arith.mulf %34, %48 : vector<8x1xf32>
    %51 = arith.subf %49, %50 : vector<8x1xf32>
    %52 = vector.broadcast %48 : vector<8x1xf32> to vector<8x648xf32>
    %53 = arith.mulf %28, %52 : vector<8x648xf32>
    %54 = vector.broadcast %51 : vector<8x1xf32> to vector<8x648xf32>
    %55 = arith.addf %53, %54 : vector<8x648xf32>
    %cst_42 = arith.constant 0.000000e+00 : f32
    %56 = vector.broadcast %cst_42 : f32 to vector<8x648xf32>
    %57 = arith.maximumf %55, %56 : vector<8x648xf32>
    %58 = vector.broadcast %0 : vector<1x648xf32> to vector<8x648xf32>
    %59 = arith.mulf %57, %58 : vector<8x648xf32>
    %c0_43 = arith.constant 0 : index
    %c128_44 = arith.constant 128 : index
    %60 = vector.load %arg11[%c0_43, %c128_44] : memref<8x904xf32, #tpu.memory_space<vmem>>, vector<8x648xf32>
    tpu.vector_store %arg11[%c0_43, %c128_44], %59 {strides = array<i32>} : memref<8x904xf32, #tpu.memory_space<vmem>>, vector<8x648xf32>,
    %c0_45 = arith.constant 0 : index
    %c109_46 = arith.constant 109 : index
    %61 = vector.load %arg11[%c0_45, %c109_46] : memref<8x904xf32, #tpu.memory_space<vmem>>, vector<8x648xf32>
    %c0_47 = arith.constant 0 : index
    %c0_48 = arith.constant 0 : index
    %62 = vector.load %arg12[%c0_47, %c0_48] : memref<72x648xf32, #tpu.memory_space<vmem>>, vector<8x648xf32>
    tpu.vector_store %arg12[%c0_47, %c0_48], %61 {strides = array<i32>} : memref<72x648xf32, #tpu.memory_space<vmem>>, vector<8x648xf32>,
    %c0_49 = arith.constant 0 : index
    %c110_50 = arith.constant 110 : index
    %63 = vector.load %arg11[%c0_49, %c110_50] : memref<8x904xf32, #tpu.memory_space<vmem>>, vector<8x648xf32>
    %c8_51 = arith.constant 8 : index
    %c0_52 = arith.constant 0 : index
    %64 = vector.load %arg12[%c8_51, %c0_52] : memref<72x648xf32, #tpu.memory_space<vmem>>, vector<8x648xf32>
    tpu.vector_store %arg12[%c8_51, %c0_52], %63 {strides = array<i32>} : memref<72x648xf32, #tpu.memory_space<vmem>>, vector<8x648xf32>,
    %c0_53 = arith.constant 0 : index
    %c111_54 = arith.constant 111 : index
    %65 = vector.load %arg11[%c0_53, %c111_54] : memref<8x904xf32, #tpu.memory_space<vmem>>, vector<8x648xf32>
    %c16_55 = arith.constant 16 : index
    %c0_56 = arith.constant 0 : index
    %66 = vector.load %arg12[%c16_55, %c0_56] : memref<72x648xf32, #tpu.memory_space<vmem>>, vector<8x648xf32>
    tpu.vector_store %arg12[%c16_55, %c0_56], %65 {strides = array<i32>} : memref<72x648xf32, #tpu.memory_space<vmem>>, vector<8x648xf32>,
    %c0_57 = arith.constant 0 : index
    %c127_58 = arith.constant 127 : index
    %67 = vector.load %arg11[%c0_57, %c127_58] : memref<8x904xf32, #tpu.memory_space<vmem>>, vector<8x648xf32>
    %c24_59 = arith.constant 24 : index
    %c0_60 = arith.constant 0 : index
    %68 = vector.load %arg12[%c24_59, %c0_60] : memref<72x648xf32, #tpu.memory_space<vmem>>, vector<8x648xf32>
    tpu.vector_store %arg12[%c24_59, %c0_60], %67 {strides = array<i32>} : memref<72x648xf32, #tpu.memory_space<vmem>>, vector<8x648xf32>,
    %c0_61 = arith.constant 0 : index
    %c128_62 = arith.constant 128 : index
    %69 = vector.load %arg11[%c0_61, %c128_62] : memref<8x904xf32, #tpu.memory_space<vmem>>, vector<8x648xf32>
    %c32_63 = arith.constant 32 : index
    %c0_64 = arith.constant 0 : index
    %70 = vector.load %arg12[%c32_63, %c0_64] : memref<72x648xf32, #tpu.memory_space<vmem>>, vector<8x648xf32>
    tpu.vector_store %arg12[%c32_63, %c0_64], %69 {strides = array<i32>} : memref<72x648xf32, #tpu.memory_space<vmem>>, vector<8x648xf32>,
    %c0_65 = arith.constant 0 : index
    %c129_66 = arith.constant 129 : index
    %71 = vector.load %arg11[%c0_65, %c129_66] : memref<8x904xf32, #tpu.memory_space<vmem>>, vector<8x648xf32>
    %c40 = arith.constant 40 : index
    %c0_67 = arith.constant 0 : index
    %72 = vector.load %arg12[%c40, %c0_67] : memref<72x648xf32, #tpu.memory_space<vmem>>, vector<8x648xf32>
    tpu.vector_store %arg12[%c40, %c0_67], %71 {strides = array<i32>} : memref<72x648xf32, #tpu.memory_space<vmem>>, vector<8x648xf32>,
    %c0_68 = arith.constant 0 : index
    %c145_69 = arith.constant 145 : index
    %73 = vector.load %arg11[%c0_68, %c145_69] : memref<8x904xf32, #tpu.memory_space<vmem>>, vector<8x648xf32>
    %c48 = arith.constant 48 : index
    %c0_70 = arith.constant 0 : index
    %74 = vector.load %arg12[%c48, %c0_70] : memref<72x648xf32, #tpu.memory_space<vmem>>, vector<8x648xf32>
    tpu.vector_store %arg12[%c48, %c0_70], %73 {strides = array<i32>} : memref<72x648xf32, #tpu.memory_space<vmem>>, vector<8x648xf32>,
    %c0_71 = arith.constant 0 : index
    %c146_72 = arith.constant 146 : index
    %75 = vector.load %arg11[%c0_71, %c146_72] : memref<8x904xf32, #tpu.memory_space<vmem>>, vector<8x648xf32>
    %c56 = arith.constant 56 : index
    %c0_73 = arith.constant 0 : index
    %76 = vector.load %arg12[%c56, %c0_73] : memref<72x648xf32, #tpu.memory_space<vmem>>, vector<8x648xf32>
    tpu.vector_store %arg12[%c56, %c0_73], %75 {strides = array<i32>} : memref<72x648xf32, #tpu.memory_space<vmem>>, vector<8x648xf32>,
    %c0_74 = arith.constant 0 : index
    %c147_75 = arith.constant 147 : index
    %77 = vector.load %arg11[%c0_74, %c147_75] : memref<8x904xf32, #tpu.memory_space<vmem>>, vector<8x648xf32>
    %c64 = arith.constant 64 : index
    %c0_76 = arith.constant 0 : index
    %78 = vector.load %arg12[%c64, %c0_76] : memref<72x648xf32, #tpu.memory_space<vmem>>, vector<8x648xf32>
    tpu.vector_store %arg12[%c64, %c0_76], %77 {strides = array<i32>} : memref<72x648xf32, #tpu.memory_space<vmem>>, vector<8x648xf32>,
    %c0_77 = arith.constant 0 : index
    %c0_78 = arith.constant 0 : index
    %79 = vector.load %arg5[%c0_77, %c0_78] : memref<8x72xf32, #tpu.memory_space<vmem>>, vector<8x72xf32>
    %c0_79 = arith.constant 0 : index
    %c0_80 = arith.constant 0 : index
    %80 = vector.load %arg12[%c0_79, %c0_80] : memref<72x648xf32, #tpu.memory_space<vmem>>, vector<72x648xf32>
    %cst_81 = arith.constant dense<0.000000e+00> : vector<8x648xf32>
    %81 = tpu.matmul %79, %80, %cst_81 {dimension_numbers = #tpu.dot_dimension_numbers<[1], [0], [0], [1], [0, 0, 1, 1], [], []>} : vector<8x72xf32>, vector<72x648xf32>, vector<8x648xf32> -> vector<8x648xf32>
    %c0_82 = arith.constant 0 : index
    %c0_83 = arith.constant 0 : index
    %82 = vector.load %arg6[%c0_82, %c0_83] : memref<8x1xf32, #tpu.memory_space<vmem>>, vector<8x1xf32>
    %83 = vector.broadcast %82 : vector<8x1xf32> to vector<8x648xf32>
    %84 = arith.addf %81, %83 : vector<8x648xf32>
    %85 = vector.broadcast %0 : vector<1x648xf32> to vector<8x648xf32>
    %86 = arith.mulf %84, %85 : vector<8x648xf32>
    %cst_84 = arith.constant dense<0.000000e+00> : vector<8xf32>
    %87 = vector.multi_reduction <add>, %86, %cst_84 [1] : vector<8x648xf32> to vector<8xf32>
    %88 = vector.shape_cast %87 : vector<8xf32> to vector<8x1xf32>
    %cst_85 = arith.constant 0.001953125 : f32
    %89 = vector.broadcast %cst_85 : f32 to vector<8x1xf32>
    %90 = arith.mulf %88, %89 : vector<8x1xf32>
    %91 = vector.broadcast %90 : vector<8x1xf32> to vector<8x648xf32>
    %92 = arith.subf %84, %91 : vector<8x648xf32>
    %93 = vector.broadcast %0 : vector<1x648xf32> to vector<8x648xf32>
    %94 = arith.mulf %92, %93 : vector<8x648xf32>
    %95 = arith.mulf %94, %94 : vector<8x648xf32>
    %cst_86 = arith.constant dense<0.000000e+00> : vector<8xf32>
    %96 = vector.multi_reduction <add>, %95, %cst_86 [1] : vector<8x648xf32> to vector<8xf32>
    %97 = vector.shape_cast %96 : vector<8xf32> to vector<8x1xf32>
    %cst_87 = arith.constant 0.001953125 : f32
    %98 = vector.broadcast %cst_87 : f32 to vector<8x1xf32>
    %99 = arith.mulf %97, %98 : vector<8x1xf32>
    %c0_88 = arith.constant 0 : index
    %c0_89 = arith.constant 0 : index
    %100 = vector.load %arg7[%c0_88, %c0_89] : memref<8x1xf32, #tpu.memory_space<vmem>>, vector<8x1xf32>
    %cst_90 = arith.constant 9.99999974E-6 : f32
    %101 = vector.broadcast %cst_90 : f32 to vector<8x1xf32>
    %102 = arith.addf %99, %101 : vector<8x1xf32>
    %103 = math.rsqrt %102 : vector<8x1xf32>
    %104 = arith.mulf %100, %103 : vector<8x1xf32>
    %c0_91 = arith.constant 0 : index
    %c0_92 = arith.constant 0 : index
    %105 = vector.load %arg8[%c0_91, %c0_92] : memref<8x1xf32, #tpu.memory_space<vmem>>, vector<8x1xf32>
    %106 = arith.mulf %90, %104 : vector<8x1xf32>
    %107 = arith.subf %105, %106 : vector<8x1xf32>
    %108 = vector.broadcast %104 : vector<8x1xf32> to vector<8x648xf32>
    %109 = arith.mulf %84, %108 : vector<8x648xf32>
    %110 = vector.broadcast %107 : vector<8x1xf32> to vector<8x648xf32>
    %111 = arith.addf %109, %110 : vector<8x648xf32>
    %cst_93 = arith.constant 0.000000e+00 : f32
    %112 = vector.broadcast %cst_93 : f32 to vector<8x648xf32>
    %113 = arith.maximumf %111, %112 : vector<8x648xf32>
    %114 = vector.broadcast %0 : vector<1x648xf32> to vector<8x648xf32>
    %115 = arith.mulf %113, %114 : vector<8x648xf32>
    %c0_94 = arith.constant 0 : index
    %c0_95 = arith.constant 0 : index
    %116 = vector.load %arg10[%c0_94, %c0_95] : memref<8x648xf32, #tpu.memory_space<vmem>>, vector<8x648xf32>
    tpu.vector_store %arg10[%c0_94, %c0_95], %115 {strides = array<i32>} : memref<8x648xf32, #tpu.memory_space<vmem>>, vector<8x648xf32>,
    return
  }
}

</mosaic_0001>

<bundles_post_ra>
// kernel: inconv_forward.1
= control target key start
LH: loop header
LB: loop body
LE: loop exit
PB: predicated region body
PF: predicated region fallthrough
CT: control target
= control target key end

     0   :  { %v1584_v0 = vmov 0.0   ;;  %vm62_vm0 = vcmask 60416   ;;  %s1585_s19 = smov 109   ;;  %s1587_s20 = smov 110   ;;  %vm425_vm1 = vcmask 891904   ;;  %vm335_vm2 = vcmask 908288   ;;  %s2157_s0 = inlined_call_operand.vmem [shape: f32[4,648], index: 0, kind: input, shape index: {}]   ;;  %s2158_s2 = inlined_call_operand.vmem [shape: f32[8,1], index: 2, kind: input, shape index: {}]   ;;  %s2159_s1 = inlined_call_operand.vmem [shape: f32[8,36], index: 1, kind: input, shape index: {}]   ;;  %s2160_s9 = inlined_call_operand.vmem [shape: f32[1,648], index: 9, kind: input, shape index: {}]   ;;  %s2161_s3 = inlined_call_operand.vmem [shape: f32[8,1], index: 3, kind: input, shape index: {}]   ;;  %s2162_s4 = inlined_call_operand.vmem [shape: f32[8,1], index: 4, kind: input, shape index: {}]   ;;  %s2163_s6 = inlined_call_operand.vmem [shape: f32[8,1], index: 6, kind: input, shape index: {}]   ;;  %s2164_s5 = inlined_call_operand.vmem [shape: f32[8,72], index: 5, kind: input, shape index: {}]   ;;  %s2165_s7 = inlined_call_operand.vmem [shape: f32[8,1], index: 7, kind: input, shape index: {}]   ;;  %s2166_s8 = inlined_call_operand.vmem [shape: f32[8,1], index: 8, kind: input, shape index: {}]   ;;  %s2167_s10 = inlined_call_operand.vmem [shape: f32[8,648], index: 10, kind: output, shape index: {}]  }
   0x1   :  { %39 = vst [vmem:[#allocation2 + $0x18] sm:$0xff] %v1584_v0  ;;  %v46_v1 = vld [vmem:[%s2157_s0 + $0x8] sm:$0xff]  ;;  %36 = vst [vmem:[#allocation2] sm:$0xff] %v1584_v0  ;;  %v45_v2 = vld [vmem:[%s2157_s0] sm:$0xff]  ;;  %567 = vmatprep.mubr.f32.mxu0 %v1584_v0  ;;  %638 = vmatprep.mubr.f32.mxu1 %v1584_v0  ;;  %s1588_s21 = smov 127   ;;  %s1589_s22 = smov 17  }
   0x2   :  { %37 = vst [vmem:[#allocation2 + $0x8] sm:$0xff] %v1584_v0  ;;  %38 = vst [vmem:[#allocation2 + $0x10] sm:$0xff] %v1584_v0  ;;  %v47_v3 = vld [vmem:[%s2157_s0 + $0x10] sm:$0xff]  ;;  %v52_v4 = vcombine.high %v46_v1, %v46_v1  ;;  %v51_v5 = vcombine.high %v45_v2, %v45_v2  ;;  %s1586_s0 = smov 111   ;;  %s1590_s23 = smov 1   ;;  %vm383_vm3 = vcmask 900096  }
   0x3   :  { %40 = vst [vmem:[#allocation2 + $0x20] sm:$0xff] %v1584_v0  ;;  %41 = vst [vmem:[#allocation2 + $0x28] sm:$0xff] %v1584_v0  ;;  %v53_v6 = vcombine.high %v47_v3, %v47_v3  ;;  %s1591_s24 = smov 19   ;;  %s1592_s25 = smov 18   ;;  %vm484_vm4 = vcmask 1043456   ;;  %vm293_vm5 = vcmask 1039360  }
   0x4   :  { %42 = vst [vmem:[#allocation2 + $0x30] sm:$0xff] %v1584_v0  ;;  %59 = vst [vmem:[#allocation2 + $0x18] sm:$0xf] %v46_v1  ;;  %vm179_vm6 = vcmask 138240   ;;  %vm232_vm7 = vcmask 7168   ;;  %vm88_vm8 = vcmask 154624  }
   0x5   :  { %57 = vst [vmem:[#allocation2 + $0x8] sm:$0xf] %v45_v2  ;;  %61 = vst [vmem:[#allocation2 + $0x28] sm:$0xf] %v47_v3  ;;  %vm136_vm9 = vcmask 146432   ;;  %vm480_vm10 = vcmask 293888  }
   0x6   :  { %58 = vst [vmem:[#allocation2 + $0x10] sm:$0xf] %v51_v5  ;;  %60 = vst [vmem:[#allocation2 + $0x20] sm:$0xf] %v52_v4  ;;  %vm153_vm11 = vcmask 64516   ;;  %vm43_vm12 = vcmask 64512  }
   0x7   :  { %63 = vst.msk [vmem:[#allocation2 + $0x30] sm:$0xf] %vm62_vm0, %v53_v6  ;;  %vm1242_vm13 = vcmask 588800  }
   0x8   :  { %v197_v33 = vld [vmem:[#allocation2] sm:$0xf] }
   0x9   :  { %v211_v34 = vrot.slane %v197_v33, 4  ;;  %v155_v35 = vld [vmem:[#allocation2] sm:$0xf] }
   0xa   :  { %v106_v44 = vld [vmem:[#allocation2] sm:$0xf] }
   0xb   :  { %v403_v7 = vld [vmem:[#allocation2 + $0x18] sm:$0xf]  ;;  %v118_v45 = vrot.slane %v106_v44, 4  ;;  %v64_v46 = vld [vmem:[#allocation2] sm:$0xf] }
   0xc   :  { %v401_v8 = vld [vmem:[#allocation2 + $0x8] sm:$0xf]  ;;  %417 = vrot.lane.b32.xlu0 %v403_v7, %s1585_s19  ;;  %v313_v9 = vld [vmem:[#allocation2 + $0x18] sm:$0xf] }
   0xd   :  { %413 = vrot.lane.b32.xlu1 %v401_v8, %s1585_s19  ;;  %v311_v10 = vld [vmem:[#allocation2 + $0x8] sm:$0xf]  ;;  %v355_v11 = vld [vmem:[#allocation2 + $0x18] sm:$0xf]  ;;  %v402_v12 = vld [vmem:[#allocation2 + $0x10] sm:$0xf] }
   0xe   :  { %v312_v13 = vld [vmem:[#allocation2 + $0x10] sm:$0xf]  ;;  %v367_v15 = vrot.slane %v355_v11, 4  ;;  %v353_v17 = vld [vmem:[#allocation2 + $0x8] sm:$0xf] }
   0xf   :  { %v354_v14 = vld [vmem:[#allocation2 + $0x10] sm:$0xf]  ;;  %v365_v19 = vrot.slane %v353_v17, 4  ;;  %v265_v21 = vld [vmem:[#allocation2 + $0x18] sm:$0xf] }
  0x10   :  { %327 = vrot.lane.b32.xlu0 %v313_v9, %s1586_s0  ;;  %v366_v16 = vrot.slane %v354_v14, 4  ;;  %v264_v18 = vld [vmem:[#allocation2 + $0x10] sm:$0xf]  ;;  %v263_v22 = vld [vmem:[#allocation2 + $0x8] sm:$0xf]  ;;  %v277_v23 = vrot.slane %v265_v21, 4 }
  0x11   :  { %323 = vrot.lane.b32.xlu1 %v311_v10, %s1586_s0  ;;  %v276_v20 = vrot.slane %v264_v18, 4  ;;  %v275_v24 = vrot.slane %v263_v22, 4  ;;  %v252_v25 = vld [vmem:[#allocation2 + $0x10] sm:$0xf]  ;;  %v251_v26 = vld [vmem:[#allocation2 + $0x8] sm:$0xf] }
  0x12   :  { %v156_v27 = vld [vmem:[#allocation2 + $0x8] sm:$0xf]  ;;  %258 = vst [vmem:[#allocation3 + $0x68] sm:$0xf] %v252_v25  ;;  %257 = vst [vmem:[#allocation3 + $0x60] sm:$0xf] %v251_v26 }
  0x13   :  { %v157_v28 = vld [vmem:[#allocation2 + $0x10] sm:$0xf]  ;;  %v198_v29 = vld [vmem:[#allocation2 + $0x8] sm:$0xf]  ;;  %v404_v36 = vld [vmem:[#allocation2 + $0x20] sm:$0xf] }
  0x14   :  { %415 = vrot.lane.b32.xlu0 %v402_v12, %s1585_s19  ;;  %v199_v30 = vld [vmem:[#allocation2 + $0x10] sm:$0xf]  ;;  %v212_v31 = vrot.slane %v198_v29, 4  ;;  %v405_v37 = vld [vmem:[#allocation2 + $0x28] sm:$0xf]  ;;  %v474_v25 = vld [vmem:[%s2158_s2] sm:$0xff] }
  0x15   :  { %325 = vrot.lane.b32.xlu1 %v312_v13, %s1586_s0  ;;  %v213_v32 = vrot.slane %v199_v30, 4  ;;  %v65_v38 = vld [vmem:[#allocation2 + $0x8] sm:$0xf]  ;;  %v66_v39 = vld [vmem:[#allocation2 + $0x10] sm:$0xf] }
  0x16   :  { %v107_v40 = vld [vmem:[#allocation2 + $0x8] sm:$0xf]  ;;  %v108_v41 = vld [vmem:[#allocation2 + $0x10] sm:$0xf]  ;;  %v254_v47 = vld [vmem:[#allocation2 + $0x20] sm:$0xf] }
  0x17   :  { %v119_v42 = vrot.slane %v107_v40, 4  ;;  %v120_v43 = vrot.slane %v108_v41, 4  ;;  %v253_v48 = vld [vmem:[#allocation2 + $0x18] sm:$0xf]  ;;  %v314_v49 = vld [vmem:[#allocation2 + $0x20] sm:$0xf] }
  0x18   :  { %375 = vrot.lane.b32.xlu0 %v367_v15, %s1587_s20  ;;  %260 = vst [vmem:[#allocation3 + $0x78] sm:$0xf] %v254_v47  ;;  %259 = vst [vmem:[#allocation3 + $0x70] sm:$0xf] %v253_v48  ;;  %v315_v50 = vld [vmem:[#allocation2 + $0x28] sm:$0xf] }
  0x19   :  { %373 = vrot.lane.b32.xlu1 %v366_v16, %s1587_s20  ;;  %v356_v51 = vld [vmem:[#allocation2 + $0x20] sm:$0xf]  ;;  %v357_v52 = vld [vmem:[#allocation2 + $0x28] sm:$0xf]  ;;  %v406_v59 = vld [vmem:[#allocation2 + $0x30] sm:$0xf] }
  0x1a   :  { %v368_v53 = vrot.slane %v356_v51, 4  ;;  %v369_v54 = vrot.slane %v357_v52, 4  ;;  %v266_v55 = vld [vmem:[#allocation2 + $0x20] sm:$0xf]  ;;  %v267_v56 = vld [vmem:[#allocation2 + $0x28] sm:$0xf] }
  0x1b   :  { %v278_v57 = vrot.slane %v266_v55, 4  ;;  %v279_v58 = vrot.slane %v267_v56, 4  ;;  %v158_v60 = vld [vmem:[#allocation2 + $0x18] sm:$0xf]  ;;  %v159_v63 = vld [vmem:[#allocation2 + $0x20] sm:$0xf] }
  0x1c   :  { %371 = vrot.lane.b32.xlu0 %v365_v19, %s1587_s20  ;;  %v200_v61 = vld [vmem:[#allocation2 + $0x18] sm:$0xf]  ;;  %v201_v1 = vld [vmem:[#allocation2 + $0x20] sm:$0xf]  ;;  %v316_v3 = vld [vmem:[#allocation2 + $0x30] sm:$0xf] }
  0x1d   :  { %283 = vrot.lane.b32.xlu1 %v276_v20, %s1588_s21  ;;  %v214_v62 = vrot.slane %v200_v61, 4  ;;  %v215_v2 = vrot.slane %v201_v1, 4  ;;  %v358_v4 = vld [vmem:[#allocation2 + $0x30] sm:$0xf]  ;;  %v255_v6 = vld [vmem:[#allocation2 + $0x28] sm:$0xf] }
  0x1e   :  { %v256_v5 = vld [vmem:[#allocation2 + $0x30] sm:$0xf]  ;;  %v370_v7 = vrot.slane %v358_v4, 4  ;;  %261 = vst [vmem:[#allocation3 + $0x80] sm:$0xf] %v255_v6 }
  0x1f   :  { %262 = vst.msk [vmem:[#allocation3 + $0x88] sm:$0xf] %vm62_vm0, %v256_v5  ;;  %v67_v8 = vld [vmem:[#allocation2 + $0x18] sm:$0xf]  ;;  %v68_v11 = vld [vmem:[#allocation2 + $0x20] sm:$0xf] }
  0x20   :  { %285 = vrot.lane.b32.xlu0 %v277_v23, %s1588_s21  ;;  %v109_v9 = vld [vmem:[#allocation2 + $0x18] sm:$0xf]  ;;  %v110_v12 = vld [vmem:[#allocation2 + $0x20] sm:$0xf]  ;;  %v268_v13 = vld [vmem:[#allocation2 + $0x30] sm:$0xf] }
  0x21   :  { %281 = vrot.lane.b32.xlu1 %v275_v24, %s1588_s21  ;;  %v121_v10 = vrot.slane %v109_v9, 4  ;;  %v122_v14 = vrot.slane %v110_v12, 4  ;;  %v280_v15 = vrot.slane %v268_v13, 4  ;;  %v202_v16 = vld [vmem:[#allocation2 + $0x28] sm:$0xf]  ;;  %v1593_v24 = vmov 0  }
  0x22   :  { %v203_v17 = vld [vmem:[#allocation2 + $0x30] sm:$0xf]  ;;  %v216_v18 = vrot.slane %v202_v16, 4  ;;  %v160_v20 = vld [vmem:[#allocation2 + $0x28] sm:$0xf]  ;;  %1574 = vset.pattern.permute.xlu1 %v1593_v24  ;;  %1575 = vset.pattern.permute.xlu0 %v1593_v24  ;;  %v1774_v24 = vld [vmem:[%s2159_s1] sm:$0xff] }
  0x23   :  { %v217_v19 = vrot.slane %v203_v17, 4  ;;  %v69_v21 = vld [vmem:[#allocation2 + $0x28] sm:$0xf] }
  0x24   :  { %169 = vrot.lane.b32.xlu0 %v156_v27, %s1589_s22  ;;  %v111_v22 = vld [vmem:[#allocation2 + $0x28] sm:$0xf] }
  0x25   :  { %171 = vrot.lane.b32.xlu1 %v157_v28, %s1589_s22  ;;  %v123_v23 = vrot.slane %v111_v22, 4 }
  0x28   :  { %220 = vrot.lane.b32.xlu0 %v212_v31, %s1590_s23 }
  0x29   :  { %222 = vrot.lane.b32.xlu1 %v213_v32, %s1590_s23 }
  0x2c   :  { %167 = vrot.lane.b32.xlu0 %v155_v35, %s1589_s22 }
  0x2d   :  { %218 = vrot.lane.b32.xlu1 %v211_v34, %s1590_s23 }
  0x30   :  { %419 = vrot.lane.b32.xlu0 %v404_v36, %s1585_s19 }
  0x31   :  { %421 = vrot.lane.b32.xlu1 %v405_v37, %s1585_s19 }
  0x34   :  { %78 = vrot.lane.b32.xlu0 %v65_v38, %s1591_s24 }
  0x35   :  { %80 = vrot.lane.b32.xlu1 %v66_v39, %s1591_s24 }
  0x38   :  { %126 = vrot.lane.b32.xlu0 %v119_v42, %s1592_s25 }
  0x39   :  { %128 = vrot.lane.b32.xlu1 %v120_v43, %s1592_s25 }
  0x3c   :  { %76 = vrot.lane.b32.xlu0 %v64_v46, %s1591_s24 }
  0x3d   :  { %124 = vrot.lane.b32.xlu1 %v118_v45, %s1592_s25 }
  0x40   :  { %329 = vrot.lane.b32.xlu0 %v314_v49, %s1586_s0 }
  0x41   :  { %331 = vrot.lane.b32.xlu1 %v315_v50, %s1586_s0 }
  0x44   :  { %377 = vrot.lane.b32.xlu0 %v368_v53, %s1587_s20 }
  0x45   :  { %379 = vrot.lane.b32.xlu1 %v369_v54, %s1587_s20 }
  0x48   :  { %287 = vrot.lane.b32.xlu0 %v278_v57, %s1588_s21 }
  0x49   :  { %289 = vrot.lane.b32.xlu1 %v279_v58, %s1588_s21 }
  0x4c   :  { %423 = vrot.lane.b32.xlu0 %v406_v59, %s1585_s19 }
  0x4d   :  { %173 = vrot.lane.b32.xlu1 %v158_v60, %s1589_s22 }
  0x50   :  { %175 = vrot.lane.b32.xlu0 %v159_v63, %s1589_s22 }
  0x51   :  { %224 = vrot.lane.b32.xlu1 %v214_v62, %s1590_s23 }
  0x54   :  { %226 = vrot.lane.b32.xlu0 %v215_v2, %s1590_s23 }
  0x55   :  { %333 = vrot.lane.b32.xlu1 %v316_v3, %s1586_s0 }
  0x58   :  { %381 = vrot.lane.b32.xlu0 %v370_v7, %s1587_s20 }
  0x59   :  { %82 = vrot.lane.b32.xlu1 %v67_v8, %s1591_s24 }
  0x5c   :  { %84 = vrot.lane.b32.xlu0 %v68_v11, %s1591_s24 }
  0x5d   :  { %130 = vrot.lane.b32.xlu1 %v121_v10, %s1592_s25 }
  0x60   :  { %132 = vrot.lane.b32.xlu0 %v122_v14, %s1592_s25 }
  0x61   :  { %291 = vrot.lane.b32.xlu1 %v280_v15, %s1588_s21 }
  0x64   :  { %228 = vrot.lane.b32.xlu0 %v216_v18, %s1590_s23 }
  0x65   :  { %230 = vrot.lane.b32.xlu1 %v217_v19, %s1590_s23 }
  0x68   :  { %177 = vrot.lane.b32.xlu0 %v160_v20, %s1589_s22 }
  0x69   :  { %86 = vrot.lane.b32.xlu1 %v69_v21, %s1591_s24 }
  0x6c   :  { %134 = vrot.lane.b32.xlu0 %v123_v23, %s1592_s25 }
  0x6d   :  { %477 = vperm.xlu1 %1574, %v474_v25  }
  0x7e   :  { %v1721_v26 = vpop.permute.xlu0 %417 }
  0x7f   :  { %v414_v27 = vpop.permute.xlu1 %413 }
  0x82   :  { %v1723_v28 = vpop.permute.xlu0 %327 }
  0x83   :  { %v324_v29 = vpop.permute.xlu1 %323 }
  0x86   :  { %v416_v30 = vpop.permute.xlu0 %415 }
  0x87   :  { %v326_v31 = vpop.permute.xlu1 %325  ;;  %v426_v32 = vsel %vm425_vm1, %v414_v27, %v416_v30  ;;  %v427_v33 = vsel %vm425_vm1, %v416_v30, %v1721_v26 }
  0x88   :  { %v336_v34 = vsel %vm335_vm2, %v324_v29, %v326_v31  ;;  %v337_v35 = vsel %vm335_vm2, %v326_v31, %v1723_v28  ;;  %437 = vst [vmem:[#allocation3 + $0xc0] sm:$0xf] %v426_v32  ;;  %438 = vst [vmem:[#allocation3 + $0xc8] sm:$0xf] %v427_v33 }
  0x89   :  { %347 = vst [vmem:[#allocation3 + $0x90] sm:$0xf] %v336_v34  ;;  %348 = vst [vmem:[#allocation3 + $0x98] sm:$0xf] %v337_v35 }
  0x8a   :  { %v1731_v36 = vpop.permute.xlu0 %375 }
  0x8b   :  { %v374_v37 = vpop.permute.xlu1 %373 }
  0x8c   :  { %v385_v38 = vsel %vm383_vm3, %v374_v37, %v1731_v36 }
  0x8d   :  { %396 = vst [vmem:[#allocation3 + $0x98] sm:$0xf0] %v385_v38 }
  0x8e   :  { %v372_v39 = vpop.permute.xlu0 %371 }
  0x8f   :  { %v284_v40 = vpop.permute.xlu1 %283  ;;  %v384_v41 = vsel %vm383_vm3, %v372_v39, %v374_v37  ;;  %v469_v42 = vld [vmem:[#allocation3 + $0xc8] sm:$0xf]  ;;  %v468_v43 = vld [vmem:[#allocation3 + $0xc0] sm:$0xf] }
  0x90   :  { %395 = vst [vmem:[#allocation3 + $0x90] sm:$0xf0] %v384_v41  ;;  %1552 = vmatprep.subr.msk.mxu0 %vm484_vm4, %v469_v42 }
  0x91   :  { %1553 = vmatpush1.msk.msra.mxu0 %vm484_vm4, %v468_v43 }
  0x92   :  { %v1738_v44 = vpop.permute.xlu0 %285 }
  0x93   :  { %v282_v45 = vpop.permute.xlu1 %281  ;;  %v295_v46 = vsel %vm293_vm5, %v284_v40, %v1738_v44 }
  0x94   :  { %v294_v47 = vsel %vm293_vm5, %v282_v45, %v284_v40  ;;  %v463_v48 = vld [vmem:[#allocation3 + $0x98] sm:$0xff]  ;;  %306 = vst [vmem:[#allocation3 + $0x68] sm:$0xf0] %v295_v46 }
  0x95   :  { %305 = vst [vmem:[#allocation3 + $0x60] sm:$0xf0] %v294_v47  ;;  %527 = vmatprep.subr.mxu0 %v463_v48 }
  0x96   :  { %v170_v49 = vpop.permute.xlu0 %169 }
  0x97   :  { %v1743_v50 = vpop.permute.xlu1 %171  ;;  %v462_v52 = vld [vmem:[#allocation3 + $0x90] sm:$0xff] }
  0x98   :  { %v181_v51 = vsel %vm179_vm6, %v170_v49, %v1743_v50  ;;  %528 = vmatpush1.msra.mxu0 %v462_v52 }
  0x99   :  { %192 = vst [vmem:[#allocation3 + $0x38] sm:$0xf] %v181_v51 }
  0x9a   :  { %v221_v53 = vpop.permute.xlu0 %220 }
  0x9b   :  { %v1747_v54 = vpop.permute.xlu1 %222  ;;  %v457_v56 = vld [vmem:[#allocation3 + $0x68] sm:$0xff] }
  0x9c   :  { %v234_v55 = vsel %vm232_vm7, %v221_v53, %v1747_v54  ;;  %v456_v57 = vld [vmem:[#allocation3 + $0x60] sm:$0xff]  ;;  %529 = vmatprep.subr.mxu0 %v457_v56 }
  0x9d   :  { %246 = vst [vmem:[#allocation3 + $0x38] sm:$0xf0] %v234_v55  ;;  %530 = vmatpush1.msra.mxu0 %v456_v57 }
  0x9e   :  { %v168_v58 = vpop.permute.xlu0 %167 }
  0x9f   :  { %v219_v59 = vpop.permute.xlu1 %218  ;;  %v180_v60 = vsel %vm179_vm6, %v168_v58, %v170_v49 }
  0xa0   :  { %v233_v61 = vsel %vm232_vm7, %v219_v59, %v221_v53  ;;  %191 = vst [vmem:[#allocation3 + $0x30] sm:$0xf] %v180_v60 }
  0xa1   :  { %245 = vst [vmem:[#allocation3 + $0x30] sm:$0xf0] %v233_v61 }
  0xa2   :  { %v420_v62 = vpop.permute.xlu0 %419 }
  0xa3   :  { %v422_v63 = vpop.permute.xlu1 %421  ;;  %v428_v1 = vsel %vm425_vm1, %v1721_v26, %v420_v62 }
  0xa4   :  { %v429_v2 = vsel %vm425_vm1, %v420_v62, %v422_v63  ;;  %v451_v3 = vld [vmem:[#allocation3 + $0x38] sm:$0xff]  ;;  %439 = vst [vmem:[#allocation3 + $0xd0] sm:$0xf] %v428_v1 }
  0xa5   :  { %440 = vst [vmem:[#allocation3 + $0xd8] sm:$0xf] %v429_v2  ;;  %531 = vmatprep.subr.mxu0 %v451_v3 }
  0xa6   :  { %v79_v4 = vpop.permute.xlu0 %78 }
  0xa7   :  { %v1756_v5 = vpop.permute.xlu1 %80 }
  0xa8   :  { %v90_v6 = vsel %vm88_vm8, %v79_v4, %v1756_v5  ;;  %v450_v7 = vld [vmem:[#allocation3 + $0x30] sm:$0xff] }
  0xa9   :  { %101 = vst [vmem:[#allocation3 + $0x8] sm:$0xf] %v90_v6  ;;  %532 = vmatpush1.msra.mxu0 %v450_v7 }
  0xaa   :  { %v127_v8 = vpop.permute.xlu0 %126 }
  0xab   :  { %v1760_v9 = vpop.permute.xlu1 %128  ;;  %v470_v12 = vld [vmem:[#allocation3 + $0xd0] sm:$0xf] }
  0xac   :  { %v138_v10 = vsel %vm136_vm9, %v127_v8, %v1760_v9  ;;  %v471_v11 = vld [vmem:[#allocation3 + $0xd8] sm:$0xf] }
  0xad   :  { %149 = vst [vmem:[#allocation3 + $0x8] sm:$0xf0] %v138_v10  ;;  %1555 = vmatprep.subr.msk.mxu1 %vm484_vm4, %v471_v11 }
  0xae   :  { %1556 = vmatpush1.msk.msra.mxu1 %vm484_vm4, %v470_v12  ;;  %v77_v13 = vpop.permute.xlu0 %76 }
  0xaf   :  { %v125_v14 = vpop.permute.xlu1 %124  ;;  %v89_v15 = vsel %vm88_vm8, %v77_v13, %v79_v4 }
  0xb0   :  { %v137_v16 = vsel %vm136_vm9, %v125_v14, %v127_v8  ;;  %100 = vst [vmem:[#allocation3] sm:$0xf] %v89_v15 }
  0xb1   :  { %148 = vst [vmem:[#allocation3] sm:$0xf0] %v137_v16 }
  0xb2   :  { %v330_v17 = vpop.permute.xlu0 %329 }
  0xb3   :  { %v332_v18 = vpop.permute.xlu1 %331  ;;  %v338_v19 = vsel %vm335_vm2, %v1723_v28, %v330_v17 }
  0xb4   :  { %v339_v20 = vsel %vm335_vm2, %v330_v17, %v332_v18  ;;  %v445_v21 = vld [vmem:[#allocation3 + $0x8] sm:$0xff]  ;;  %349 = vst [vmem:[#allocation3 + $0xa0] sm:$0xf] %v338_v19 }
  0xb5   :  { %350 = vst [vmem:[#allocation3 + $0xa8] sm:$0xf] %v339_v20  ;;  %533 = vmatprep.subr.mxu0 %v445_v21  ;;  %v717_v21 = vlaneseq }
  0xb6   :  { %v378_v22 = vpop.permute.xlu0 %377 }
  0xb7   :  { %v380_v23 = vpop.permute.xlu1 %379  ;;  %v386_v25 = vsel %vm383_vm3, %v1731_v36, %v378_v22 }
  0xb8   :  { %v387_v26 = vsel %vm383_vm3, %v378_v22, %v380_v23  ;;  %v444_v27 = vld [vmem:[#allocation3] sm:$0xff]  ;;  %397 = vst [vmem:[#allocation3 + $0xa0] sm:$0xf0] %v386_v25  ;;  %v718_v22 = vshrl.u32 %v717_v21, 7 }
  0xb9   :  { %398 = vst [vmem:[#allocation3 + $0xa8] sm:$0xf0] %v387_v26  ;;  %534 = vmatpush1.msra.mxu0 %v444_v27 }
  0xba   :  { %1554 = vmatmul.mubr.msk.f32.vlgmr.msra.gmra.mxu0 %vm480_vm10, %v1774_v24  ;;  %v288_v28 = vpop.permute.xlu0 %287  ;;  %v719_v25 = vsub.s32 0, %v718_v22  ;;  %v723_v26 = vsub.s32 1, %v718_v22 }
  0xbb   :  { %v290_v29 = vpop.permute.xlu1 %289  ;;  %709 = vmatprep.mubr.f32.mxu0 %v1584_v0  ;;  %v296_v30 = vsel %vm293_vm5, %v1738_v44, %v288_v28 }
  0xbc   :  { %v297_v31 = vsel %vm293_vm5, %v288_v28, %v290_v29  ;;  %307 = vst [vmem:[#allocation3 + $0x70] sm:$0xf0] %v296_v30  ;;  %v727_v30 = vsub.s32 2, %v718_v22 }
  0xbd   :  { %308 = vst [vmem:[#allocation3 + $0x78] sm:$0xf0] %v297_v31 }
  0xbe   :  { %v424_v32 = vpop.permute.xlu0 %423 }
  0xbf   :  { %v174_v33 = vpop.permute.xlu1 %173  ;;  %v430_v34 = vsel %vm425_vm1, %v422_v63, %v424_v32  ;;  %442 = vst.msk [vmem:[#allocation3 + $0xe8] sm:$0xf] %vm62_vm0, %v424_v32  ;;  %v464_v37 = vld [vmem:[#allocation3 + $0xa0] sm:$0xff] }
  0xc0   :  { %v182_v35 = vsel %vm179_vm6, %v1743_v50, %v174_v33  ;;  %v465_v36 = vld [vmem:[#allocation3 + $0xa8] sm:$0xff]  ;;  %441 = vst [vmem:[#allocation3 + $0xe0] sm:$0xf] %v430_v34 }
  0xc1   :  { %193 = vst [vmem:[#allocation3 + $0x40] sm:$0xf] %v182_v35  ;;  %598 = vmatprep.subr.mxu1 %v465_v36  ;;  %v731_v35 = vsub.s32 3, %v718_v22 }
  0xc2   :  { %599 = vmatpush1.msra.mxu1 %v464_v37  ;;  %v176_v38 = vpop.permute.xlu0 %175 }
  0xc3   :  { %v225_v39 = vpop.permute.xlu1 %224  ;;  %v183_v40 = vsel %vm179_vm6, %v174_v33, %v176_v38  ;;  %v458_v43 = vld [vmem:[#allocation3 + $0x70] sm:$0xff] }
  0xc4   :  { %v235_v41 = vsel %vm232_vm7, %v1747_v54, %v225_v39  ;;  %v459_v42 = vld [vmem:[#allocation3 + $0x78] sm:$0xff]  ;;  %194 = vst [vmem:[#allocation3 + $0x48] sm:$0xf] %v183_v40 }
  0xc5   :  { %247 = vst [vmem:[#allocation3 + $0x40] sm:$0xf0] %v235_v41  ;;  %600 = vmatprep.subr.mxu1 %v459_v42 }
  0xc6   :  { %601 = vmatpush1.msra.mxu1 %v458_v43  ;;  %v227_v44 = vpop.permute.xlu0 %226  ;;  %v473_v46 = vld [vmem:[#allocation3 + $0xe8] sm:$0xf] }
  0xc7   :  { %v334_v45 = vpop.permute.xlu1 %333  ;;  %v236_v47 = vsel %vm232_vm7, %v225_v39, %v227_v44  ;;  %1558 = vmatprep.subr.msk.mxu0 %vm484_vm4, %v473_v46  ;;  %v472_v49 = vld [vmem:[#allocation3 + $0xe0] sm:$0xf]  ;;  %v739_v46 = vsub.s32 5, %v718_v22 }
  0xc8   :  { %v340_v48 = vsel %vm335_vm2, %v332_v18, %v334_v45  ;;  %352 = vst.msk [vmem:[#allocation3 + $0xb8] sm:$0xf] %vm62_vm0, %v334_v45  ;;  %248 = vst [vmem:[#allocation3 + $0x48] sm:$0xf0] %v236_v47  ;;  %1559 = vmatpush1.msk.msra.mxu0 %vm484_vm4, %v472_v49  ;;  %v735_v45 = vsub.s32 4, %v718_v22 }
  0xc9   :  { %351 = vst [vmem:[#allocation3 + $0xb0] sm:$0xf] %v340_v48 }
  0xca   :  { %v382_v50 = vpop.permute.xlu0 %381 }
  0xcb   :  { %v83_v51 = vpop.permute.xlu1 %82  ;;  %v388_v52 = vsel %vm383_vm3, %v380_v23, %v382_v50  ;;  %400 = vst.msk [vmem:[#allocation3 + $0xb8] sm:$0xf0] %vm153_vm11, %v382_v50 }
  0xcc   :  { %v91_v53 = vsel %vm88_vm8, %v1756_v5, %v83_v51  ;;  %399 = vst [vmem:[#allocation3 + $0xb0] sm:$0xf0] %v388_v52  ;;  %v452_v59 = vld [vmem:[#allocation3 + $0x40] sm:$0xff] }
  0xcd   :  { %102 = vst [vmem:[#allocation3 + $0x10] sm:$0xf] %v91_v53 }
  0xce   :  { %v85_v54 = vpop.permute.xlu0 %84 }
  0xcf   :  { %v131_v55 = vpop.permute.xlu1 %130  ;;  %v92_v56 = vsel %vm88_vm8, %v83_v51, %v85_v54  ;;  %v453_v58 = vld [vmem:[#allocation3 + $0x48] sm:$0xff] }
  0xd0   :  { %v139_v57 = vsel %vm136_vm9, %v1760_v9, %v131_v55  ;;  %103 = vst [vmem:[#allocation3 + $0x18] sm:$0xf] %v92_v56  ;;  %602 = vmatprep.subr.mxu1 %v453_v58 }
  0xd1   :  { %150 = vst [vmem:[#allocation3 + $0x10] sm:$0xf0] %v139_v57  ;;  %603 = vmatpush1.msra.mxu1 %v452_v59 }
  0xd2   :  { %v133_v60 = vpop.permute.xlu0 %132  ;;  %v467_v62 = vld [vmem:[#allocation3 + $0xb8] sm:$0xff] }
  0xd3   :  { %v292_v61 = vpop.permute.xlu1 %291  ;;  %v140_v63 = vsel %vm136_vm9, %v131_v55, %v133_v60  ;;  %669 = vmatprep.subr.mxu0 %v467_v62  ;;  %v466_v2 = vld [vmem:[#allocation3 + $0xb0] sm:$0xff] }
  0xd4   :  { %v298_v1 = vsel %vm293_vm5, %v290_v29, %v292_v61  ;;  %310 = vst.msk [vmem:[#allocation3 + $0x88] sm:$0xf0] %vm153_vm11, %v292_v61  ;;  %151 = vst [vmem:[#allocation3 + $0x18] sm:$0xf0] %v140_v63  ;;  %670 = vmatpush1.msra.mxu0 %v466_v2  ;;  %v35_v29 = vld [vmem:[%s2160_s9] sm:$0x3f] }
  0xd5   :  { %309 = vst [vmem:[#allocation3 + $0x80] sm:$0xf0] %v298_v1  ;;  %v1831_v33 = vrot.slane %v35_v29, %v723_v26  ;;  %v1835_v37 = vrot.slane %v35_v29, %v727_v30  ;;  %v1841_v41 = vrot.slane %v35_v29, %v731_v35  ;;  %v1849_v49 = vrot.slane %v35_v29, %v735_v45 }
  0xd6   :  { %v229_v3 = vpop.permute.xlu0 %228  ;;  %v1851_v52 = vrot.slane %v35_v29, %v739_v46 }
  0xd7   :  { %v231_v4 = vpop.permute.xlu1 %230  ;;  %v237_v5 = vsel %vm232_vm7, %v227_v44, %v229_v3 }
  0xd8   :  { %v238_v6 = vsel %vm232_vm7, %v229_v3, %v231_v4  ;;  %249 = vst [vmem:[#allocation3 + $0x50] sm:$0xf0] %v237_v5  ;;  %v446_v14 = vld [vmem:[#allocation3 + $0x10] sm:$0xff] }
  0xd9   :  { %250 = vst.msk [vmem:[#allocation3 + $0x58] sm:$0xf0] %vm153_vm11, %v238_v6 }
  0xda   :  { %v178_v7 = vpop.permute.xlu0 %177 }
  0xdb   :  { %v87_v8 = vpop.permute.xlu1 %86  ;;  %v461_v9 = vld [vmem:[#allocation3 + $0x88] sm:$0xff]  ;;  %v184_v10 = vsel %vm179_vm6, %v176_v38, %v178_v7  ;;  %196 = vst.msk [vmem:[#allocation3 + $0x58] sm:$0xf] %vm62_vm0, %v178_v7  ;;  %v447_v12 = vld [vmem:[#allocation3 + $0x18] sm:$0xff] }
  0xdc   :  { %v93_v11 = vsel %vm88_vm8, %v85_v54, %v87_v8  ;;  %105 = vst.msk [vmem:[#allocation3 + $0x28] sm:$0xf] %vm62_vm0, %v87_v8  ;;  %671 = vmatprep.subr.mxu0 %v461_v9  ;;  %v460_v13 = vld [vmem:[#allocation3 + $0x80] sm:$0xff]  ;;  %195 = vst [vmem:[#allocation3 + $0x50] sm:$0xf] %v184_v10  ;;  %604 = vmatprep.subr.mxu1 %v447_v12 }
  0xdd   :  { %104 = vst [vmem:[#allocation3 + $0x20] sm:$0xf] %v93_v11  ;;  %672 = vmatpush1.msra.mxu0 %v460_v13  ;;  %605 = vmatpush1.msra.mxu1 %v446_v14 }
  0xde   :  { %v135_v15 = vpop.permute.xlu0 %134  ;;  %1557 = vmatmul.mubr.msk.f32.vlgmr.msra.gmra.mxu1 %vm480_vm10, %v1774_v24 }
  0xdf   :  { %v141_v16 = vsel %vm136_vm9, %v133_v60, %v135_v15  ;;  %154 = vst.msk [vmem:[#allocation3 + $0x28] sm:$0xf0] %vm153_vm11, %v135_v15  ;;  %1310 = vmatprep.mubr.f32.mxu1 %v1584_v0 }
  0xe0   :  { %152 = vst [vmem:[#allocation3 + $0x20] sm:$0xf0] %v141_v16 }
  0xe2   :  { %v455_v17 = vld [vmem:[#allocation3 + $0x58] sm:$0xff] }
  0xe3   :  { %673 = vmatprep.subr.mxu0 %v455_v17  ;;  %v454_v18 = vld [vmem:[#allocation3 + $0x50] sm:$0xff] }
  0xe4   :  { %674 = vmatpush1.msra.mxu0 %v454_v18 }
  0xe6   :  { %v449_v19 = vld [vmem:[#allocation3 + $0x28] sm:$0xff] }
  0xe7   :  { %675 = vmatprep.subr.mxu0 %v449_v19  ;;  %v448_v20 = vld [vmem:[#allocation3 + $0x20] sm:$0xff] }
  0xe8   :  { %676 = vmatpush1.msra.mxu0 %v448_v20  ;;  %v478_v28 = vpop.permute.xlu1 %477 }
  0xe9   :  { %1560 = vmatmul.mubr.msk.f32.vlgmr.msra.gmra.mxu0 %vm480_vm10, %v1774_v24  ;;  %v1829_v24 = vrot.slane %v35_v29, %v719_v25 }
  0xea   :  { %1381 = vmatprep.mubr.f32.mxu0 %v1584_v0 }
 0x17a   :  { %v569_v23 = vpop.f32.mrf.mxu0 }
 0x17b   :  { %v1825_v31 = vadd.f32 %v569_v23, %v478_v28 }
 0x17c   :  { %v571_v27 = vpop.f32.mrf.mxu0 }
 0x17d   :  { %v1827_v32 = vadd.f32 %v571_v27, %v478_v28  ;;  %v747_v38 = vmul.f32 %v1829_v24, %v1825_v31 }
 0x17f   :  { %v748_v39 = vmul.f32 %v1831_v33, %v1827_v32 }
 0x181   :  { %v753_v43 = vadd.f32 %v748_v39, %v747_v38 }
 0x19e   :  { %v640_v34 = vpop.f32.mrf.mxu1 }
 0x19f   :  { %v1833_v36 = vadd.f32 %v640_v34, %v478_v28  ;;  %v793_v34 = vld [vmem:[%s2162_s4] sm:$0xff] }
 0x1a0   :  { %v642_v40 = vpop.f32.mrf.mxu1 }
 0x1a1   :  { %v749_v42 = vmul.f32 %v1835_v37, %v1833_v36  ;;  %v1845_v44 = vadd.f32 %v642_v40, %v478_v28 }
 0x1a3   :  { %v754_v47 = vadd.f32 %v753_v43, %v749_v42  ;;  %v750_v48 = vmul.f32 %v1841_v41, %v1845_v44 }
 0x1a5   :  { %v755_v56 = vadd.f32 %v754_v47, %v750_v48 }
 0x1a9   :  { %v711_v50 = vpop.f32.mrf.mxu0 }
 0x1aa   :  { %v712_v51 = vadd.f32 %v711_v50, %v478_v28 }
 0x1ab   :  { %v713_v53 = vpop.f32.mrf.mxu0 }
 0x1ac   :  { %v751_v54 = vmul.f32 %v1849_v49, %v712_v51  ;;  %v714_v55 = vadd.f32 %v713_v53, %v478_v28  ;;  %v789_v28 = vld [vmem:[%s2161_s3] sm:$0xff] }
 0x1ae   :  { %v752_v57 = vmul.f32 %v1851_v52, %v714_v55  ;;  %v756_v58 = vadd.f32 %v755_v56, %v751_v54 }
 0x1b0   :  { %v757_v59 = vsel %vm43_vm12, %v752_v57, 0.0 }
 0x1b1   :  { %v758_v60 = vadd.f32 %v757_v59, %v756_v58 }
 0x1b3   :  { %759 = vadd.xlane.f32.xlu0 %v758_v60 }
 0x23c   :  { %v760_v61 = vpop.xlane.xlu0 %759 }
 0x23d   :  { %v761_v62 = vmul.f32 0.001953125, %v760_v61 }
 0x23f   :  { %v762_v63 = vsub.f32 %v1825_v31, %v761_v62  ;;  %v763_v1 = vsub.f32 %v1827_v32, %v761_v62  ;;  %v764_v2 = vsub.f32 %v1833_v36, %v761_v62  ;;  %v765_v3 = vsub.f32 %v1845_v44, %v761_v62 }
 0x240   :  { %v767_v4 = vsub.f32 %v714_v55, %v761_v62  ;;  %v766_v5 = vsub.f32 %v712_v51, %v761_v62 }
 0x241   :  { %v768_v6 = vmul.f32 %v762_v63, %v1829_v24  ;;  %v769_v7 = vmul.f32 %v763_v1, %v1831_v33  ;;  %v770_v8 = vmul.f32 %v764_v2, %v1835_v37  ;;  %v771_v9 = vmul.f32 %v765_v3, %v1841_v41  ;;  %v1236_v2 = vld [vmem:[%s2163_s6] sm:$0xff] }
 0x242   :  { %v773_v12 = vmul.f32 %v767_v4, %v1851_v52  ;;  %v772_v13 = vmul.f32 %v766_v5, %v1849_v49 }
 0x243   :  { %v774_v10 = vmul.f32 %v768_v6, %v768_v6  ;;  %v775_v11 = vmul.f32 %v769_v7, %v769_v7  ;;  %v776_v14 = vmul.f32 %v770_v8, %v770_v8  ;;  %v777_v16 = vmul.f32 %v771_v9, %v771_v9 }
 0x244   :  { %v779_v18 = vmul.f32 %v773_v12, %v773_v12  ;;  %v778_v19 = vmul.f32 %v772_v13, %v772_v13 }
 0x245   :  { %v780_v15 = vadd.f32 %v775_v11, %v774_v10 }
 0x246   :  { %v784_v22 = vsel %vm43_vm12, %v779_v18, 0.0 }
 0x247   :  { %v781_v17 = vadd.f32 %v780_v15, %v776_v14 }
 0x249   :  { %v782_v20 = vadd.f32 %v781_v17, %v777_v16 }
 0x24b   :  { %v783_v21 = vadd.f32 %v782_v20, %v778_v19 }
 0x24d   :  { %v785_v23 = vadd.f32 %v784_v22, %v783_v21 }
 0x24f   :  { %786 = vadd.xlane.f32.xlu1 %v785_v23 }
 0x2d8   :  { %v787_v25 = vpop.xlane.xlu1 %786 }
 0x2d9   :  { %v788_v26 = vmul.f32 0.001953125, %v787_v25 }
 0x2db   :  { %v790_v27 = vadd.f32 1e-05, %v788_v26 }
 0x2dd   :  { %1579 = vrsqrt.f32 %v790_v27 }
 0x2ea   :  { %v1580_v29 = vpop.eup %1579 }
 0x2eb   :  { %v792_v30 = vmul.f32 %v1580_v29, %v789_v28 }
 0x2ed   :  { %798 = vperm.xlu0 %1575, %v792_v30   ;;  %v794_v35 = vmul.f32 %v792_v30, %v761_v62 }
 0x2ef   :  { %v795_v38 = vsub.f32 %v793_v34, %v794_v35 }
 0x2f1   :  { %809 = vperm.xlu1 %1574, %v795_v38   ;;  %973 = vrot.lane.b32.xlu0 %v1584_v0, %s1590_s23 }
 0x2f5   :  { %930 = vrot.lane.b32.xlu1 %v1584_v0, %s1589_s22  ;;  %889 = vrot.lane.b32.xlu0 %v1584_v0, %s1592_s25 }
 0x2f9   :  { %848 = vrot.lane.b32.xlu1 %v1584_v0, %s1591_s24 }
 0x368   :  { %v799_v39 = vpop.permute.xlu0 %798 }
 0x369   :  { %v801_v40 = vmul.f32 %v799_v39, %v1825_v31  ;;  %v802_v42 = vmul.f32 %v799_v39, %v1827_v32  ;;  %v803_v43 = vmul.f32 %v799_v39, %v1833_v36  ;;  %v804_v45 = vmul.f32 %v799_v39, %v1845_v44 }
 0x36a   :  { %v805_v46 = vmul.f32 %v799_v39, %v712_v51  ;;  %v806_v47 = vmul.f32 %v799_v39, %v714_v55 }
 0x36c   :  { %v810_v48 = vpop.permute.xlu1 %809  ;;  %v974_v3 = vpop.permute.xlu0 %973 }
 0x36d   :  { %v812_v50 = vadd.f32 %v810_v48, %v801_v40  ;;  %v813_v53 = vadd.f32 %v810_v48, %v802_v42  ;;  %v814_v54 = vadd.f32 %v810_v48, %v803_v43  ;;  %v815_v56 = vadd.f32 %v810_v48, %v804_v45 }
 0x36e   :  { %v816_v57 = vadd.f32 %v810_v48, %v805_v46  ;;  %v817_v58 = vadd.f32 %v810_v48, %v806_v47 }
 0x36f   :  { %v818_v59 = vmax.f32 %v812_v50, 0.0  ;;  %v819_v0 = vmax.f32 %v813_v53, 0.0  ;;  %v820_v60 = vmax.f32 %v814_v54, 0.0  ;;  %v821_v61 = vmax.f32 %v815_v56, 0.0 }
 0x370   :  { %v822_v31 = vmax.f32 %v816_v57, 0.0  ;;  %v823_v62 = vmax.f32 %v817_v58, 0.0  ;;  %v931_v4 = vpop.permute.xlu1 %930  ;;  %v890_v5 = vpop.permute.xlu0 %889 }
 0x371   :  { %v1886_v32 = vmul.f32 %v818_v59, %v1829_v24  ;;  %v1889_v36 = vmul.f32 %v819_v0, %v1831_v33  ;;  %v1892_v44 = vmul.f32 %v820_v60, %v1835_v37  ;;  %v1895_v51 = vmul.f32 %v821_v61, %v1841_v41 }
 0x372   :  { %v1898_v55 = vmul.f32 %v822_v31, %v1849_v49  ;;  %v829_v63 = vmul.f32 %v823_v62, %v1851_v52 }
 0x373   :  { %830 = vst [vmem:[#allocation2 + $0x8] sm:$0xff] %v1886_v32  ;;  %831 = vst [vmem:[#allocation2 + $0x10] sm:$0xff] %v1889_v36  ;;  %1154 = vrot.lane.b32.xlu1 %v1889_v36, %s1585_s19  ;;  %1072 = vrot.lane.b32.xlu0 %v1889_v36, %s1586_s0 }
 0x374   :  { %832 = vst [vmem:[#allocation2 + $0x18] sm:$0xff] %v1892_v44  ;;  %833 = vst [vmem:[#allocation2 + $0x20] sm:$0xff] %v1895_v51  ;;  %v2001_v6 = vpop.permute.xlu1 %848 }
 0x375   :  { %1012 = vst [vmem:[#allocation3 + $0xc8] sm:$0xff] %v1889_v36  ;;  %1011 = vst [vmem:[#allocation3 + $0xc0] sm:$0xff] %v1886_v32 }
 0x376   :  { %1014 = vst [vmem:[#allocation3 + $0xd8] sm:$0xff] %v1895_v51  ;;  %1013 = vst [vmem:[#allocation3 + $0xd0] sm:$0xff] %v1892_v44 }
 0x377   :  { %834 = vst [vmem:[#allocation2 + $0x28] sm:$0xff] %v1898_v55  ;;  %835 = vst.msk [vmem:[#allocation2 + $0x30] sm:$0xff] %vm43_vm12, %v829_v63  ;;  %1156 = vrot.lane.b32.xlu1 %v1892_v44, %s1585_s19  ;;  %1070 = vrot.lane.b32.xlu0 %v1886_v32, %s1586_s0 }
 0x378   :  { %1015 = vst [vmem:[#allocation3 + $0xe0] sm:$0xff] %v1898_v55 }
 0x37b   :  { %1152 = vrot.lane.b32.xlu1 %v1886_v32, %s1585_s19  ;;  %1033 = vrot.lane.b32.xlu0 %v1892_v44, %s1588_s21 }
 0x37e   :  { %v1145_v1 = vld [vmem:[#allocation2 + $0x30] sm:$0xff] }
 0x37f   :  { %1016 = vst.msk [vmem:[#allocation3 + $0xe8] sm:$0xff] %vm43_vm12, %v1145_v1  ;;  %1113 = vrot.lane.b32.xlu1 %v1889_v36, %s1587_s20  ;;  %975 = vrot.lane.b32.xlu0 %v1886_v32, %s1590_s23 }
 0x383   :  { %1115 = vrot.lane.b32.xlu1 %v1892_v44, %s1587_s20  ;;  %934 = vrot.lane.b32.xlu0 %v1889_v36, %s1589_s22 }
 0x387   :  { %1111 = vrot.lane.b32.xlu1 %v1886_v32, %s1587_s20  ;;  %891 = vrot.lane.b32.xlu0 %v1886_v32, %s1592_s25 }
 0x38b   :  { %1074 = vrot.lane.b32.xlu1 %v1892_v44, %s1586_s0  ;;  %1160 = vrot.lane.b32.xlu0 %v1898_v55, %s1585_s19 }
 0x38f   :  { %1031 = vrot.lane.b32.xlu1 %v1889_v36, %s1588_s21  ;;  %852 = vrot.lane.b32.xlu0 %v1889_v36, %s1591_s24 }
 0x393   :  { %1029 = vrot.lane.b32.xlu1 %v1886_v32, %s1588_s21  ;;  %1117 = vrot.lane.b32.xlu0 %v1895_v51, %s1587_s20 }
 0x397   :  { %977 = vrot.lane.b32.xlu1 %v1889_v36, %s1590_s23  ;;  %1076 = vrot.lane.b32.xlu0 %v1895_v51, %s1586_s0 }
 0x39b   :  { %932 = vrot.lane.b32.xlu1 %v1886_v32, %s1589_s22  ;;  %1162 = vrot.lane.b32.xlu0 %v1145_v1, %s1585_s19 }
 0x39f   :  { %893 = vrot.lane.b32.xlu1 %v1889_v36, %s1592_s25  ;;  %1037 = vrot.lane.b32.xlu0 %v1898_v55, %s1588_s21 }
 0x3a3   :  { %1158 = vrot.lane.b32.xlu1 %v1895_v51, %s1585_s19  ;;  %1080 = vrot.lane.b32.xlu0 %v1145_v1, %s1586_s0 }
 0x3a7   :  { %981 = vrot.lane.b32.xlu0 %v1895_v51, %s1590_s23  ;;  %850 = vrot.lane.b32.xlu1 %v1886_v32, %s1591_s24 }
 0x3ab   :  { %936 = vrot.lane.b32.xlu0 %v1892_v44, %s1589_s22  ;;  %1119 = vrot.lane.b32.xlu1 %v1898_v55, %s1587_s20 }
 0x3af   :  { %983 = vrot.lane.b32.xlu0 %v1898_v55, %s1590_s23  ;;  %1078 = vrot.lane.b32.xlu1 %v1898_v55, %s1586_s0 }
 0x3b3   :  { %895 = vrot.lane.b32.xlu0 %v1892_v44, %s1592_s25  ;;  %1035 = vrot.lane.b32.xlu1 %v1895_v51, %s1588_s21 }
 0x3b7   :  { %854 = vrot.lane.b32.xlu0 %v1892_v44, %s1591_s24  ;;  %1121 = vrot.lane.b32.xlu1 %v1145_v1, %s1587_s20 }
 0x3bb   :  { %940 = vrot.lane.b32.xlu0 %v1898_v55, %s1589_s22  ;;  %979 = vrot.lane.b32.xlu1 %v1892_v44, %s1590_s23 }
 0x3bf   :  { %858 = vrot.lane.b32.xlu0 %v1898_v55, %s1591_s24  ;;  %1039 = vrot.lane.b32.xlu1 %v1145_v1, %s1588_s21 }
 0x3c3   :  { %938 = vrot.lane.b32.xlu1 %v1895_v51, %s1589_s22 }
 0x3c7   :  { %985 = vrot.lane.b32.xlu1 %v1145_v1, %s1590_s23  ;;  %v2050_v1 = vld [vmem:[%s2164_s5] sm:$0xff] }
 0x3cb   :  { %897 = vrot.lane.b32.xlu1 %v1895_v51, %s1592_s25 }
 0x3cf   :  { %856 = vrot.lane.b32.xlu1 %v1895_v51, %s1591_s24 }
 0x3d3   :  { %899 = vrot.lane.b32.xlu1 %v1898_v55, %s1592_s25 }
 0x3d7   :  { %1239 = vperm.xlu1 %1574, %v1236_v2  }
 0x3e5   :  { %v1073_v7 = vpop.permute.xlu0 %1072  ;;  %v1155_v8 = vpop.permute.xlu1 %1154 }
 0x3e9   :  { %v1071_v9 = vpop.permute.xlu0 %1070  ;;  %v2003_v10 = vpop.permute.xlu1 %1156 }
 0x3ea   :  { %v1082_v11 = vsel %vm335_vm2, %v1071_v9, %v1073_v7  ;;  %v1165_v12 = vsel %vm425_vm1, %v1155_v8, %v2003_v10 }
 0x3eb   :  { %1260 = vmatprep.subr.mxu1 %v1165_v12 }
 0x3ed   :  { %v2008_v13 = vpop.permute.xlu0 %1033  ;;  %v1153_v14 = vpop.permute.xlu1 %1152 }
 0x3ee   :  { %v1164_v15 = vsel %vm425_vm1, %v1153_v14, %v1155_v8 }
 0x3ef   :  { %1261 = vmatpush1.msra.mxu1 %v1164_v15 }
 0x3f1   :  { %v976_v16 = vpop.permute.xlu0 %975  ;;  %v1114_v17 = vpop.permute.xlu1 %1113 }
 0x3f2   :  { %v987_v18 = vsel %vm232_vm7, %v974_v3, %v976_v16 }
 0x3f3   :  { %999 = vst [vmem:[#allocation3 + $0x90] sm:$0xff] %v987_v18 }
 0x3f5   :  { %v2012_v19 = vpop.permute.xlu0 %934  ;;  %v1116_v20 = vpop.permute.xlu1 %1115 }
 0x3f6   :  { %v1124_v21 = vsel %vm383_vm3, %v1114_v17, %v1116_v20 }
 0x3f7   :  { %1262 = vmatprep.subr.mxu1 %v1124_v21 }
 0x3f9   :  { %v892_v22 = vpop.permute.xlu0 %891  ;;  %v1112_v23 = vpop.permute.xlu1 %1111 }
 0x3fa   :  { %v901_v25 = vsel %vm136_vm9, %v890_v5, %v892_v22  ;;  %v1123_v26 = vsel %vm383_vm3, %v1112_v23, %v1114_v17 }
 0x3fb   :  { %912 = vst [vmem:[#allocation3 + $0x30] sm:$0xff] %v901_v25  ;;  %1263 = vmatpush1.msra.mxu1 %v1123_v26 }
 0x3fd   :  { %v1161_v27 = vpop.permute.xlu0 %1160  ;;  %v1075_v28 = vpop.permute.xlu1 %1074 }
 0x3fe   :  { %v1083_v29 = vsel %vm335_vm2, %v1073_v7, %v1075_v28  ;;  %v1583_v7 = vld [vmem:[#allocation2] sm:$0xff] }
 0x3ff   :  { %1264 = vmatprep.subr.mxu1 %v1083_v29 }
 0x400   :  { %1265 = vmatpush1.msra.mxu1 %v1082_v11 }
 0x401   :  { %v2018_v30 = vpop.permute.xlu0 %852  ;;  %v1032_v34 = vpop.permute.xlu1 %1031 }
 0x402   :  { %v1042_v35 = vsel %vm293_vm5, %v1032_v34, %v2008_v13 }
 0x403   :  { %1266 = vmatprep.subr.mxu1 %v1042_v35 }
 0x405   :  { %v1118_v38 = vpop.permute.xlu0 %1117  ;;  %v1030_v39 = vpop.permute.xlu1 %1029 }
 0x406   :  { %v1125_v40 = vsel %vm383_vm3, %v1116_v20, %v1118_v38  ;;  %v1041_v42 = vsel %vm293_vm5, %v1030_v39, %v1032_v34 }
 0x407   :  { %1267 = vmatpush1.msra.mxu1 %v1041_v42  ;;  %v1211_v42 = vld [vmem:[#allocation3 + $0xe8] sm:$0xff] }
 0x408   :  { %1268 = vmatprep.subr.mxu1 %v1889_v36 }
 0x409   :  { %v1077_v43 = vpop.permute.xlu0 %1076  ;;  %v2025_v45 = vpop.permute.xlu1 %977  ;;  %1269 = vmatpush1.msra.mxu1 %v1886_v32 }
 0x40a   :  { %v1084_v46 = vsel %vm335_vm2, %v1075_v28, %v1077_v43  ;;  %v988_v47 = vsel %vm232_vm7, %v976_v16, %v2025_v45 }
 0x40b   :  { %1000 = vst [vmem:[#allocation3 + $0x98] sm:$0xff] %v988_v47  ;;  %1270 = vmatprep.subr.mxu1 %v988_v47 }
 0x40c   :  { %1271 = vmatpush1.msra.mxu1 %v987_v18 }
 0x40d   :  { %v1163_v48 = vpop.permute.xlu0 %1162  ;;  %v933_v50 = vpop.permute.xlu1 %932 }
 0x40e   :  { %v1168_v53 = vsel %vm425_vm1, %v1161_v27, %v1163_v48  ;;  %1180 = vst.msk [vmem:[#allocation3 + $0x1a8] sm:$0xff] %vm43_vm12, %v1163_v48  ;;  %v942_v54 = vsel %vm179_vm6, %v931_v4, %v933_v50  ;;  %v943_v56 = vsel %vm179_vm6, %v933_v50, %v2012_v19 }
 0x40f   :  { %953 = vst [vmem:[#allocation3 + $0x60] sm:$0xff] %v942_v54  ;;  %954 = vst [vmem:[#allocation3 + $0x68] sm:$0xff] %v943_v56  ;;  %1272 = vmatprep.subr.mxu1 %v943_v56 }
 0x410   :  { %1273 = vmatpush1.msra.mxu1 %v942_v54 }
 0x411   :  { %v2036_v57 = vpop.permute.xlu0 %1037  ;;  %v894_v58 = vpop.permute.xlu1 %893 }
 0x412   :  { %v902_v59 = vsel %vm136_vm9, %v892_v22, %v894_v58 }
 0x413   :  { %913 = vst [vmem:[#allocation3 + $0x38] sm:$0xff] %v902_v59  ;;  %1274 = vmatprep.subr.mxu1 %v902_v59 }
 0x414   :  { %1275 = vmatpush1.msra.mxu1 %v901_v25 }
 0x415   :  { %v1081_v0 = vpop.permute.xlu0 %1080  ;;  %v1159_v60 = vpop.permute.xlu1 %1158  ;;  %v1235_v2 = vld [vmem:[#allocation3 + $0x1a8] sm:$0xff] }
 0x416   :  { %1098 = vst.msk [vmem:[#allocation3 + $0x148] sm:$0xff] %vm43_vm12, %v1081_v0  ;;  %v1166_v61 = vsel %vm425_vm1, %v2003_v10, %v1159_v60  ;;  %v1167_v31 = vsel %vm425_vm1, %v1159_v60, %v1161_v27 }
 0x417   :  { %1331 = vmatprep.subr.mxu0 %v1167_v31 }
 0x418   :  { %1332 = vmatpush1.msra.mxu0 %v1166_v61 }
 0x419   :  { %v982_v62 = vpop.permute.xlu0 %981  ;;  %v851_v32 = vpop.permute.xlu1 %850 }
 0x41a   :  { %v860_v36 = vsel %vm88_vm8, %v2001_v6, %v851_v32  ;;  %v861_v63 = vsel %vm88_vm8, %v851_v32, %v2018_v30 }
 0x41b   :  { %871 = vst [vmem:[#allocation3] sm:$0xff] %v860_v36  ;;  %872 = vst [vmem:[#allocation3 + $0x8] sm:$0xff] %v861_v63  ;;  %1276 = vmatprep.subr.mxu1 %v861_v63 }
 0x41c   :  { %1277 = vmatpush1.msra.mxu1 %v860_v36 }
 0x41d   :  { %v937_v3 = vpop.permute.xlu0 %936  ;;  %v1120_v4 = vpop.permute.xlu1 %1119  ;;  %1561 = vmatmul.mubr.msk.f32.vlgmr.msra.gmra.mxu1 %vm1242_vm13, %v2050_v1  ;;  %1402 = vmatprep.subr.mxu1 %v1235_v2  ;;  %v1223_v29 = vld [vmem:[#allocation3 + $0x148] sm:$0xff] }
 0x41e   :  { %v944_v5 = vsel %vm179_vm6, %v2012_v19, %v937_v3  ;;  %v1126_v6 = vsel %vm383_vm3, %v1118_v38, %v1120_v4  ;;  %1403 = vmatpush1.msra.mxu1 %v1168_v53  ;;  %1452 = vmatprep.mubr.f32.mxu1 %v1583_v7 }
 0x41f   :  { %955 = vst [vmem:[#allocation3 + $0x70] sm:$0xff] %v944_v5  ;;  %1333 = vmatprep.subr.mxu0 %v1126_v6 }
 0x420   :  { %1334 = vmatpush1.msra.mxu0 %v1125_v40 }
 0x421   :  { %v984_v8 = vpop.permute.xlu0 %983  ;;  %v1079_v9 = vpop.permute.xlu1 %1078 }
 0x422   :  { %v2058_v10 = vsel %vm232_vm7, %v982_v62, %v984_v8  ;;  %v1085_v11 = vsel %vm335_vm2, %v1077_v43, %v1079_v9  ;;  %v1086_v12 = vsel %vm335_vm2, %v1079_v9, %v1081_v0 }
 0x423   :  { %1003 = vst [vmem:[#allocation3 + $0xb0] sm:$0xff] %v2058_v10  ;;  %1335 = vmatprep.subr.mxu0 %v1085_v11 }
 0x424   :  { %1336 = vmatpush1.msra.mxu0 %v1084_v46 }
 0x425   :  { %v896_v14 = vpop.permute.xlu0 %895  ;;  %v1036_v15 = vpop.permute.xlu1 %1035 }
 0x426   :  { %v903_v16 = vsel %vm136_vm9, %v894_v58, %v896_v14  ;;  %v1043_v17 = vsel %vm293_vm5, %v2008_v13, %v1036_v15  ;;  %v1044_v18 = vsel %vm293_vm5, %v1036_v15, %v2036_v57 }
 0x427   :  { %914 = vst [vmem:[#allocation3 + $0x40] sm:$0xff] %v903_v16  ;;  %1337 = vmatprep.subr.mxu0 %v1044_v18 }
 0x428   :  { %1338 = vmatpush1.msra.mxu0 %v1043_v17 }
 0x429   :  { %v855_v19 = vpop.permute.xlu0 %854  ;;  %v1122_v20 = vpop.permute.xlu1 %1121  ;;  %1339 = vmatprep.subr.mxu0 %v1895_v51 }
 0x42a   :  { %v862_v21 = vsel %vm88_vm8, %v2018_v30, %v855_v19  ;;  %v1127_v22 = vsel %vm383_vm3, %v1120_v4, %v1122_v20  ;;  %1139 = vst.msk [vmem:[#allocation3 + $0x178] sm:$0xff] %vm43_vm12, %v1122_v20  ;;  %1340 = vmatpush1.msra.mxu0 %v1892_v44 }
 0x42b   :  { %873 = vst [vmem:[#allocation3 + $0x10] sm:$0xff] %v862_v21 }
 0x42d   :  { %v941_v13 = vpop.permute.xlu0 %940  ;;  %v980_v23 = vpop.permute.xlu1 %979 }
 0x42e   :  { %958 = vst.msk [vmem:[#allocation3 + $0x88] sm:$0xff] %vm43_vm12, %v941_v13  ;;  %v989_v25 = vsel %vm232_vm7, %v2025_v45, %v980_v23  ;;  %v990_v26 = vsel %vm232_vm7, %v980_v23, %v982_v62 }
 0x42f   :  { %1001 = vst [vmem:[#allocation3 + $0xa0] sm:$0xff] %v989_v25  ;;  %1002 = vst [vmem:[#allocation3 + $0xa8] sm:$0xff] %v990_v26  ;;  %1341 = vmatprep.subr.mxu0 %v990_v26 }
 0x430   :  { %1342 = vmatpush1.msra.mxu0 %v989_v25 }
 0x431   :  { %v859_v51 = vpop.permute.xlu0 %858  ;;  %v1040_v27 = vpop.permute.xlu1 %1039  ;;  %v1229_v28 = vld [vmem:[#allocation3 + $0x178] sm:$0xff] }
 0x432   :  { %876 = vst.msk [vmem:[#allocation3 + $0x28] sm:$0xff] %vm43_vm12, %v859_v51  ;;  %v1045_v44 = vsel %vm293_vm5, %v2036_v57, %v1040_v27  ;;  %1057 = vst.msk [vmem:[#allocation3 + $0x118] sm:$0xff] %vm43_vm12, %v1040_v27  ;;  %1404 = vmatprep.subr.mxu1 %v1229_v28 }
 0x433   :  { %1405 = vmatpush1.msra.mxu1 %v1127_v22 }
 0x434   :  { %1406 = vmatprep.subr.mxu1 %v1223_v29 }
 0x435   :  { %1407 = vmatpush1.msra.mxu1 %v1086_v12  ;;  %v939_v30 = vpop.permute.xlu1 %938  ;;  %v1199_v53 = vld [vmem:[#allocation3 + $0x88] sm:$0xff] }
 0x436   :  { %v945_v34 = vsel %vm179_vm6, %v937_v3, %v939_v30  ;;  %v946_v35 = vsel %vm179_vm6, %v939_v30, %v941_v13 }
 0x437   :  { %956 = vst [vmem:[#allocation3 + $0x78] sm:$0xff] %v945_v34  ;;  %957 = vst [vmem:[#allocation3 + $0x80] sm:$0xff] %v946_v35  ;;  %1343 = vmatprep.subr.mxu0 %v945_v34 }
 0x438   :  { %1344 = vmatpush1.msra.mxu0 %v944_v5 }
 0x439   :  { %v986_v38 = vpop.permute.xlu1 %985  ;;  %v1217_v39 = vld [vmem:[#allocation3 + $0x118] sm:$0xff]  ;;  %v1187_v57 = vld [vmem:[#allocation3 + $0x28] sm:$0xff] }
 0x43a   :  { %v992_v40 = vsel %vm232_vm7, %v984_v8, %v986_v38  ;;  %1408 = vmatprep.subr.mxu1 %v1217_v39 }
 0x43b   :  { %1004 = vst.msk [vmem:[#allocation3 + $0xb8] sm:$0xff] %vm43_vm12, %v992_v40  ;;  %1409 = vmatpush1.msra.mxu1 %v1045_v44 }
 0x43c   :  { %1410 = vmatprep.subr.mxu1 %v1211_v42 }
 0x43d   :  { %1411 = vmatpush1.msra.mxu1 %v1898_v55  ;;  %v898_v43 = vpop.permute.xlu1 %897 }
 0x43e   :  { %v904_v45 = vsel %vm136_vm9, %v896_v14, %v898_v43 }
 0x43f   :  { %915 = vst [vmem:[#allocation3 + $0x48] sm:$0xff] %v904_v45  ;;  %1345 = vmatprep.subr.mxu0 %v904_v45 }
 0x440   :  { %1346 = vmatpush1.msra.mxu0 %v903_v16 }
 0x441   :  { %v857_v46 = vpop.permute.xlu1 %856 }
 0x442   :  { %v863_v47 = vsel %vm88_vm8, %v855_v19, %v857_v46  ;;  %v864_v48 = vsel %vm88_vm8, %v857_v46, %v859_v51  ;;  %v1205_v50 = vld [vmem:[#allocation3 + $0xb8] sm:$0xff] }
 0x443   :  { %874 = vst [vmem:[#allocation3 + $0x18] sm:$0xff] %v863_v47  ;;  %875 = vst [vmem:[#allocation3 + $0x20] sm:$0xff] %v864_v48  ;;  %1412 = vmatprep.subr.mxu1 %v1205_v50  ;;  %1347 = vmatprep.subr.mxu0 %v863_v47 }
 0x444   :  { %1413 = vmatpush1.msra.mxu1 %v2058_v10  ;;  %1348 = vmatpush1.msra.mxu0 %v862_v21 }
 0x445   :  { %1414 = vmatprep.subr.mxu1 %v1199_v53  ;;  %v900_v55 = vpop.permute.xlu1 %899  ;;  %1562 = vmatmul.mubr.msk.f32.vlgmr.msra.gmra.mxu0 %vm1242_vm13, %v2050_v1 }
 0x446   :  { %v905_v54 = vsel %vm136_vm9, %v898_v43, %v900_v55  ;;  %917 = vst.msk [vmem:[#allocation3 + $0x58] sm:$0xff] %vm43_vm12, %v900_v55  ;;  %1415 = vmatpush1.msra.mxu1 %v946_v35  ;;  %v1501_v55 = vld [vmem:[%s2165_s7] sm:$0xff] }
 0x447   :  { %916 = vst [vmem:[#allocation3 + $0x50] sm:$0xff] %v905_v54 }
 0x44d   :  { %v1193_v56 = vld [vmem:[#allocation3 + $0x58] sm:$0xff] }
 0x44e   :  { %1416 = vmatprep.subr.mxu1 %v1193_v56 }
 0x44f   :  { %1417 = vmatpush1.msra.mxu1 %v905_v54 }
 0x450   :  { %1418 = vmatprep.subr.mxu1 %v1187_v57  ;;  %v1505_v57 = vld [vmem:[%s2166_s8] sm:$0xff] }
 0x451   :  { %1419 = vmatpush1.msra.mxu1 %v864_v48 }
 0x452   :  { %1563 = vmatmul.mubr.msk.f32.vlgmr.msra.gmra.mxu1 %vm1242_vm13, %v2050_v1  ;;  %v1240_v0 = vpop.permute.xlu1 %1239 }
 0x4dd   :  { %v1312_v58 = vpop.f32.mrf.mxu1 }
 0x4de   :  { %v2099_v31 = vadd.f32 %v1312_v58, %v1240_v0 }
 0x4df   :  { %v1314_v59 = vpop.f32.mrf.mxu1 }
 0x4e0   :  { %v2097_v61 = vadd.f32 %v1314_v59, %v1240_v0  ;;  %v1459_v63 = vmul.f32 %v2099_v31, %v1829_v24 }
 0x4e2   :  { %v1460_v36 = vmul.f32 %v2097_v61, %v1831_v33 }
 0x4e4   :  { %v1465_v3 = vadd.f32 %v1460_v36, %v1459_v63 }
 0x505   :  { %v1383_v60 = vpop.f32.mrf.mxu0 }
 0x506   :  { %v2101_v62 = vadd.f32 %v1383_v60, %v1240_v0 }
 0x507   :  { %v1385_v32 = vpop.f32.mrf.mxu0 }
 0x508   :  { %v1461_v1 = vmul.f32 %v2101_v62, %v1835_v37  ;;  %v1386_v2 = vadd.f32 %v1385_v32, %v1240_v0 }
 0x50a   :  { %v1466_v4 = vadd.f32 %v1465_v3, %v1461_v1  ;;  %v1462_v5 = vmul.f32 %v1386_v2, %v1841_v41 }
 0x50c   :  { %v1467_v9 = vadd.f32 %v1466_v4, %v1462_v5 }
 0x512   :  { %v1454_v6 = vpop.f32.mrf.mxu1 }
 0x513   :  { %v1455_v7 = vadd.f32 %v1454_v6, %v1240_v0 }
 0x514   :  { %v1456_v8 = vpop.f32.mrf.mxu1 }
 0x515   :  { %v1463_v10 = vmul.f32 %v1455_v7, %v1849_v49  ;;  %v1457_v11 = vadd.f32 %v1456_v8, %v1240_v0 }
 0x517   :  { %v1464_v12 = vmul.f32 %v1457_v11, %v1851_v52  ;;  %v1468_v14 = vadd.f32 %v1467_v9, %v1463_v10 }
 0x519   :  { %v1469_v15 = vsel %vm43_vm12, %v1464_v12, 0.0 }
 0x51a   :  { %v1470_v16 = vadd.f32 %v1469_v15, %v1468_v14 }
 0x51c   :  { %1471 = vadd.xlane.f32.xlu0 %v1470_v16 }
 0x5a5   :  { %v1472_v17 = vpop.xlane.xlu0 %1471 }
 0x5a6   :  { %v1473_v18 = vmul.f32 0.001953125, %v1472_v17 }
 0x5a8   :  { %v1474_v19 = vsub.f32 %v2099_v31, %v1473_v18  ;;  %v1475_v20 = vsub.f32 %v2097_v61, %v1473_v18  ;;  %v1476_v21 = vsub.f32 %v2101_v62, %v1473_v18  ;;  %v1477_v22 = vsub.f32 %v1386_v2, %v1473_v18 }
 0x5a9   :  { %v1479_v13 = vsub.f32 %v1457_v11, %v1473_v18  ;;  %v1478_v23 = vsub.f32 %v1455_v7, %v1473_v18 }
 0x5aa   :  { %v1480_v25 = vmul.f32 %v1474_v19, %v1829_v24  ;;  %v1481_v26 = vmul.f32 %v1475_v20, %v1831_v33  ;;  %v1482_v51 = vmul.f32 %v1476_v21, %v1835_v37  ;;  %v1483_v27 = vmul.f32 %v1477_v22, %v1841_v41 }
 0x5ab   :  { %v1485_v29 = vmul.f32 %v1479_v13, %v1851_v52  ;;  %v1484_v30 = vmul.f32 %v1478_v23, %v1849_v49 }
 0x5ac   :  { %v1486_v28 = vmul.f32 %v1480_v25, %v1480_v25  ;;  %v1487_v44 = vmul.f32 %v1481_v26, %v1481_v26  ;;  %v1488_v34 = vmul.f32 %v1482_v51, %v1482_v51  ;;  %v1489_v38 = vmul.f32 %v1483_v27, %v1483_v27 }
 0x5ad   :  { %v1491_v40 = vmul.f32 %v1485_v29, %v1485_v29  ;;  %v1490_v42 = vmul.f32 %v1484_v30, %v1484_v30 }
 0x5ae   :  { %v1492_v35 = vadd.f32 %v1487_v44, %v1486_v28 }
 0x5af   :  { %v1496_v46 = vsel %vm43_vm12, %v1491_v40, 0.0 }
 0x5b0   :  { %v1493_v39 = vadd.f32 %v1492_v35, %v1488_v34 }
 0x5b2   :  { %v1494_v43 = vadd.f32 %v1493_v39, %v1489_v38 }
 0x5b4   :  { %v1495_v45 = vadd.f32 %v1494_v43, %v1490_v42 }
 0x5b6   :  { %v1497_v47 = vadd.f32 %v1496_v46, %v1495_v45 }
 0x5b8   :  { %1498 = vadd.xlane.f32.xlu1 %v1497_v47 }
 0x641   :  { %v1499_v48 = vpop.xlane.xlu1 %1498 }
 0x642   :  { %v1500_v50 = vmul.f32 0.001953125, %v1499_v48 }
 0x644   :  { %v1502_v53 = vadd.f32 1e-05, %v1500_v50 }
 0x646   :  { %1581 = vrsqrt.f32 %v1502_v53 }
 0x653   :  { %v1582_v54 = vpop.eup %1581 }
 0x654   :  { %v1504_v56 = vmul.f32 %v1582_v54, %v1501_v55 }
 0x656   :  { %1510 = vperm.xlu0 %1575, %v1504_v56   ;;  %v1506_v58 = vmul.f32 %v1504_v56, %v1473_v18 }
 0x658   :  { %v1507_v59 = vsub.f32 %v1505_v57, %v1506_v58 }
 0x65a   :  { %1521 = vperm.xlu1 %1574, %v1507_v59  }
 0x6d1   :  { %v1511_v0 = vpop.permute.xlu0 %1510 }
 0x6d2   :  { %v1513_v60 = vmul.f32 %v1511_v0, %v2099_v31  ;;  %v1514_v32 = vmul.f32 %v1511_v0, %v2097_v61  ;;  %v1515_v36 = vmul.f32 %v1511_v0, %v2101_v62  ;;  %v1516_v63 = vmul.f32 %v1511_v0, %v1386_v2 }
 0x6d3   :  { %v1517_v1 = vmul.f32 %v1511_v0, %v1455_v7  ;;  %v1518_v3 = vmul.f32 %v1511_v0, %v1457_v11 }
 0x6d5   :  { %v1522_v4 = vpop.permute.xlu1 %1521 }
 0x6d6   :  { %v1524_v5 = vadd.f32 %v1522_v4, %v1513_v60  ;;  %v1525_v6 = vadd.f32 %v1522_v4, %v1514_v32  ;;  %v1526_v8 = vadd.f32 %v1522_v4, %v1515_v36  ;;  %v1527_v9 = vadd.f32 %v1522_v4, %v1516_v63 }
 0x6d7   :  { %v1528_v10 = vadd.f32 %v1522_v4, %v1517_v1  ;;  %v1529_v12 = vadd.f32 %v1522_v4, %v1518_v3 }
 0x6d8   :  { %v1530_v14 = vmax.f32 %v1524_v5, 0.0  ;;  %v1531_v15 = vmax.f32 %v1525_v6, 0.0  ;;  %v1532_v16 = vmax.f32 %v1526_v8, 0.0  ;;  %v1533_v17 = vmax.f32 %v1527_v9, 0.0 }
 0x6d9   :  { %v1534_v18 = vmax.f32 %v1528_v10, 0.0  ;;  %v1535_v31 = vmax.f32 %v1529_v12, 0.0 }
 0x6da   :  { %v1536_v61 = vmul.f32 %v1530_v14, %v1829_v24  ;;  %v1537_v62 = vmul.f32 %v1531_v15, %v1831_v33  ;;  %v1538_v2 = vmul.f32 %v1532_v16, %v1835_v37  ;;  %v1539_v7 = vmul.f32 %v1533_v17, %v1841_v41 }
 0x6db   :  { %v1540_v11 = vmul.f32 %v1534_v18, %v1849_v49  ;;  %v1541_v19 = vmul.f32 %v1535_v31, %v1851_v52 }
 0x6dc   :  { %1542 = vst [vmem:[%s2167_s10] sm:$0xff] %v1536_v61  ;;  %1543 = vst [vmem:[%s2167_s10 + $0x8] sm:$0xff] %v1537_v62 }
 0x6dd   :  { %1544 = vst [vmem:[%s2167_s10 + $0x10] sm:$0xff] %v1538_v2  ;;  %1545 = vst [vmem:[%s2167_s10 + $0x18] sm:$0xff] %v1539_v7 }
 0x6de   :  { %1546 = vst [vmem:[%s2167_s10 + $0x20] sm:$0xff] %v1540_v11  ;;  %1547 = vst.msk [vmem:[%s2167_s10 + $0x28] sm:$0xff] %vm43_vm12, %v1541_v19 }

</bundles_post_ra>
